<compile_context>
chip_gen: v7x
topology: tpu7x:2x2x1
jax: 0.10.0
libtpu: 0.0.40
codegen_flags: <defaults>
</compile_context>

<pallas_src>
import functools

import jax
import jax.numpy as jnp
from jax.experimental import pallas as pl
from jax.experimental.pallas import tpu as pltpu

LANE = 128


def _round_up(n, m):
    return (n + m - 1) // m * m


def _vae_kernel(x_ref, eps_ref,
                w1_ref, b1_ref, w2_ref, b2_ref,
                w3_ref, b3_ref,                       # fused [mu|logvar] head (lane-padded)
                w4_ref, b4_ref, w5_ref, b5_ref, w6_ref, b6_ref,
                recon_ref, ml_ref, *, z_dim):
    f32 = jnp.float32
    bf16 = jnp.bfloat16

    def lin(a, w_ref, b_ref):
        # bf16 MXU operands, f32 accumulation; bias add in f32.
        return jnp.dot(a.astype(bf16), w_ref[...],
                       preferred_element_type=f32) + b_ref[...]

    x = x_ref[...].astype(f32)

    # ---- encoder ----
    h = jnp.maximum(lin(x, w1_ref, b1_ref), 0.0)
    h = jnp.maximum(lin(h, w2_ref, b2_ref), 0.0)

    # ---- fused latent head: one lane-dense matmul + one lane-dense output ----
    ml = lin(h, w3_ref, b3_ref)            # (TILE_B, HEAD_PAD) = [mu | log_var | 0-pad]
    mu = ml[:, :z_dim]
    log_var = ml[:, z_dim:2 * z_dim]

    # ---- sampling (reparameterization) ----
    std = jnp.exp(0.5 * log_var)
    z = eps_ref[...].astype(f32) * std + mu

    # ---- decoder ----
    d = jnp.maximum(lin(z, w4_ref, b4_ref), 0.0)
    d = jnp.maximum(lin(d, w5_ref, b5_ref), 0.0)
    logits = lin(d, w6_ref, b6_ref)

    recon_ref[...] = jax.nn.sigmoid(logits).astype(recon_ref.dtype)
    ml_ref[...] = ml.astype(ml_ref.dtype)


def vae_forward(x, eps, params, *, tile_b=128):
    """x: (B, x_dim) f32, eps: (B, z_dim) f32, params: dict of f32 (W, b).

    Returns (recon, mu, log_var) each (B, ...) f32.
    """
    f32 = jnp.float32
    bf16 = jnp.bfloat16

    B, x_dim = x.shape
    z_dim = eps.shape[1]
    h_dim1 = params["w1"].shape[1]
    h_dim2 = params["w2"].shape[1]
    head_pad = max(_round_up(2 * z_dim, LANE), LANE)

    # Fuse fc31/fc32 into one head and zero-pad its N dim to a full lane width.
    w3 = jnp.concatenate([params["w31"], params["w32"]], axis=1)
    b3 = jnp.concatenate([params["b31"], params["b32"]], axis=1)
    w3 = jnp.pad(w3, ((0, 0), (0, head_pad - 2 * z_dim)))
    b3 = jnp.pad(b3, ((0, 0), (0, head_pad - 2 * z_dim)))

    # Weights go to the MXU in bf16 (halves weight DMA bytes); biases stay f32.
    names = ("w1", "b1", "w2", "b2", "w3", "b3",
             "w4", "b4", "w5", "b5", "w6", "b6")
    tensors = dict(
        w1=params["w1"].astype(bf16), b1=params["b1"].astype(f32),
        w2=params["w2"].astype(bf16), b2=params["b2"].astype(f32),
        w3=w3.astype(bf16),           b3=b3.astype(f32),
        w4=params["w4"].astype(bf16), b4=params["b4"].astype(f32),
        w5=params["w5"].astype(bf16), b5=params["b5"].astype(f32),
        w6=params["w6"].astype(bf16), b6=params["b6"].astype(f32),
    )

    # Pad the batch so a 1-D batch grid divides evenly.
    tile_b = int(min(tile_b, _round_up(B, 8)))
    bp = _round_up(B, tile_b)
    if bp != B:
        x = jnp.pad(x, ((0, bp - B), (0, 0)))
        eps = jnp.pad(eps, ((0, bp - B), (0, 0)))
    grid = (bp // tile_b,)

    def batch_spec(feat):
        return pl.BlockSpec((tile_b, feat), lambda i: (i, 0))

    def const_spec(arr):
        return pl.BlockSpec(arr.shape, lambda i: (0, 0))

    flops = 2 * bp * (x_dim * h_dim1 + h_dim1 * h_dim2 + h_dim2 * head_pad +
                      z_dim * h_dim2 + h_dim2 * h_dim1 + h_dim1 * x_dim)
    transcendentals = bp * (z_dim + x_dim)            # exp + sigmoid
    bytes_accessed = int(
        x.size * x.dtype.itemsize + eps.size * eps.dtype.itemsize +
        sum(v.size * v.dtype.itemsize for v in tensors.values()) +
        bp * x_dim * 4 + bp * head_pad * 4)
    cost = pl.CostEstimate(flops=int(flops),
                           transcendentals=int(transcendentals),
                           bytes_accessed=bytes_accessed)

    recon, ml = pl.pallas_call(
        functools.partial(_vae_kernel, z_dim=z_dim),
        out_shape=(
            jax.ShapeDtypeStruct((bp, x_dim), f32),
            jax.ShapeDtypeStruct((bp, head_pad), f32),
        ),
        grid=grid,
        in_specs=[batch_spec(x_dim), batch_spec(z_dim)] +
                 [const_spec(tensors[n]) for n in names],
        out_specs=(batch_spec(x_dim), batch_spec(head_pad)),
        compiler_params=pltpu.CompilerParams(
            dimension_semantics=("parallel",)),      # shards batch across TCs on v7x
        cost_estimate=cost,
    )(x, eps, *(tensors[n] for n in names))

    recon = recon[:B]
    mu = ml[:B, :z_dim]
    log_var = ml[:B, z_dim:2 * z_dim]
    return recon, mu, log_var


def init_params(key, x_dim, h_dim1, h_dim2, z_dim):
    """Deterministic parameter init. Weights stored (in, out); bias (1, out)."""
    dims = {
        "1": (x_dim, h_dim1),
        "2": (h_dim1, h_dim2),
        "31": (h_dim2, z_dim),
        "32": (h_dim2, z_dim),
        "4": (z_dim, h_dim2),
        "5": (h_dim2, h_dim1),
        "6": (h_dim1, x_dim),
    }
    params = {}
    for name, (fan_in, fan_out) in dims.items():
        key, kw, kb = jax.random.split(key, 3)
        bound = 1.0 / jnp.sqrt(fan_in)
        params[f"w{name}"] = jax.random.uniform(
            kw, (fan_in, fan_out), jnp.float32, -bound, bound)
        params[f"b{name}"] = jax.random.uniform(
            kb, (1, fan_out), jnp.float32, -bound, bound)
    return params


def vae_forward_ref(x, eps, params):
    """Pure-JAX reference mirroring the PyTorch forward with the same bf16
    matmul-operand / f32-accumulation numerics as the kernel."""
    bf16 = jnp.bfloat16

    def lin(a, w, b):
        return jnp.dot(a.astype(bf16), w.astype(bf16),
                       preferred_element_type=jnp.float32) + b

    h = jax.nn.relu(lin(x, params["w1"], params["b1"]))
    h = jax.nn.relu(lin(h, params["w2"], params["b2"]))
    mu = lin(h, params["w31"], params["b31"])
    log_var = lin(h, params["w32"], params["b32"])
    z = eps * jnp.exp(0.5 * log_var) + mu
    d = jax.nn.relu(lin(z, params["w4"], params["b4"]))
    d = jax.nn.relu(lin(d, params["w5"], params["b5"]))
    recon = jax.nn.sigmoid(lin(d, params["w6"], params["b6"]))
    return recon, mu, log_var


if __name__ == "__main__":
    # Shapes consistent with the module: x viewed as (-1, x_dim). Batch is kept
    # large enough (512 rows, 4 grid tiles of 128) to exercise the pipelined,
    # parallel batch grid while staying small.
    B, x_dim, h_dim1, h_dim2, z_dim = 512, 256, 128, 64, 32

    key = jax.random.PRNGKey(0)
    key, kx, keps, kp = jax.random.split(key, 4)

    x = jax.random.normal(kx, (B, x_dim), jnp.float32)
    eps = jax.random.normal(keps, (B, z_dim), jnp.float32)  # torch.randn_like(std)
    params = init_params(kp, x_dim, h_dim1, h_dim2, z_dim)

    recon, mu, log_var = vae_forward(x, eps, params, tile_b=128)
    jax.block_until_ready((recon, mu, log_var))

    # Cross-check against pure-JAX reference (same bf16/f32 matmul numerics).
    r_ref, m_ref, lv_ref = vae_forward_ref(x, eps, params)
    assert recon.shape == (B, x_dim) and mu.shape == (B, z_dim)
    assert jnp.allclose(recon, r_ref, atol=1e-3, rtol=1e-3)
    assert jnp.allclose(mu, m_ref, atol=1e-3, rtol=1e-3)
    assert jnp.allclose(log_var, lv_ref, atol=1e-3, rtol=1e-3)

    print("KERNEL_OK")
</pallas_src>

<mosaic_0001>
module attributes {stable_mosaic.version = 11 : i64} {
  func.func @_vae_kernel(%arg0: i32, %arg1: memref<128x256xf32, #tpu.memory_space<vmem>>, %arg2: memref<128x32xf32, #tpu.memory_space<vmem>>, %arg3: memref<256x128xbf16, #tpu.memory_space<vmem>>, %arg4: memref<1x128xf32, #tpu.memory_space<vmem>>, %arg5: memref<128x64xbf16, #tpu.memory_space<vmem>>, %arg6: memref<1x64xf32, #tpu.memory_space<vmem>>, %arg7: memref<64x128xbf16, #tpu.memory_space<vmem>>, %arg8: memref<1x128xf32, #tpu.memory_space<vmem>>, %arg9: memref<32x64xbf16, #tpu.memory_space<vmem>>, %arg10: memref<1x64xf32, #tpu.memory_space<vmem>>, %arg11: memref<64x128xbf16, #tpu.memory_space<vmem>>, %arg12: memref<1x128xf32, #tpu.memory_space<vmem>>, %arg13: memref<128x256xbf16, #tpu.memory_space<vmem>>, %arg14: memref<1x256xf32, #tpu.memory_space<vmem>>, %arg15: memref<128x256xf32, #tpu.memory_space<vmem>>, %arg16: memref<128x128xf32, #tpu.memory_space<vmem>>) attributes {dimension_semantics = [#tpu.dimension_semantics<parallel>], iteration_bounds = array<i64: 4>, scalar_prefetch = 0 : i64, scratch_operands = 0 : i64, tpu.core_type = #tpu.core_type<tc>, window_params = [{transform_indices = @transform_0, window_bounds = array<i64: 128, 256>}, {transform_indices = @transform_1, window_bounds = array<i64: 128, 32>}, {pipeline_mode = #tpu.pipeline_mode<synchronous>, transform_indices = @transform_2, window_bounds = array<i64: 256, 128>}, {pipeline_mode = #tpu.pipeline_mode<synchronous>, transform_indices = @transform_3, window_bounds = array<i64: 1, 128>}, {pipeline_mode = #tpu.pipeline_mode<synchronous>, transform_indices = @transform_4, window_bounds = array<i64: 128, 64>}, {pipeline_mode = #tpu.pipeline_mode<synchronous>, transform_indices = @transform_5, window_bounds = array<i64: 1, 64>}, {pipeline_mode = #tpu.pipeline_mode<synchronous>, transform_indices = @transform_6, window_bounds = array<i64: 64, 128>}, {pipeline_mode = #tpu.pipeline_mode<synchronous>, transform_indices = @transform_7, window_bounds = array<i64: 1, 128>}, {pipeline_mode = #tpu.pipeline_mode<synchronous>, transform_indices = @transform_8, window_bounds = array<i64: 32, 64>}, {pipeline_mode = #tpu.pipeline_mode<synchronous>, transform_indices = @transform_9, window_bounds = array<i64: 1, 64>}, {pipeline_mode = #tpu.pipeline_mode<synchronous>, transform_indices = @transform_10, window_bounds = array<i64: 64, 128>}, {pipeline_mode = #tpu.pipeline_mode<synchronous>, transform_indices = @transform_11, window_bounds = array<i64: 1, 128>}, {pipeline_mode = #tpu.pipeline_mode<synchronous>, transform_indices = @transform_12, window_bounds = array<i64: 128, 256>}, {pipeline_mode = #tpu.pipeline_mode<synchronous>, transform_indices = @transform_13, window_bounds = array<i64: 1, 256>}, {transform_indices = @transform_14, window_bounds = array<i64: 128, 256>}, {transform_indices = @transform_15, window_bounds = array<i64: 128, 128>}]} {
    %c0 = arith.constant 0 : index
    %c0_0 = arith.constant 0 : index
    %0 = vector.load %arg1[%c0, %c0_0] : memref<128x256xf32, #tpu.memory_space<vmem>>, vector<128x256xf32>
    %1 = arith.truncf %0 : vector<128x256xf32> to vector<128x256xbf16>
    %c0_1 = arith.constant 0 : index
    %c0_2 = arith.constant 0 : index
    %2 = vector.load %arg3[%c0_1, %c0_2] : memref<256x128xbf16, #tpu.memory_space<vmem>>, vector<256x128xbf16>
    %cst = arith.constant dense<0.000000e+00> : vector<128x128xf32>
    %3 = tpu.matmul %1, %2, %cst {dimension_numbers = #tpu.dot_dimension_numbers<[1], [0], [0], [1], [0, 0, 1, 1], [], []>} : vector<128x256xbf16>, vector<256x128xbf16>, vector<128x128xf32> -> vector<128x128xf32>
    %c0_3 = arith.constant 0 : index
    %c0_4 = arith.constant 0 : index
    %4 = vector.load %arg4[%c0_3, %c0_4] : memref<1x128xf32, #tpu.memory_space<vmem>>, vector<1x128xf32>
    %5 = vector.broadcast %4 : vector<1x128xf32> to vector<128x128xf32>
    %6 = arith.addf %3, %5 : vector<128x128xf32>
    %cst_5 = arith.constant 0.000000e+00 : f32
    %7 = vector.broadcast %cst_5 : f32 to vector<128x128xf32>
    %8 = arith.maximumf %6, %7 : vector<128x128xf32>
    %9 = arith.truncf %8 : vector<128x128xf32> to vector<128x128xbf16>
    %c0_6 = arith.constant 0 : index
    %c0_7 = arith.constant 0 : index
    %10 = vector.load %arg5[%c0_6, %c0_7] : memref<128x64xbf16, #tpu.memory_space<vmem>>, vector<128x64xbf16>
    %cst_8 = arith.constant dense<0.000000e+00> : vector<128x64xf32>
    %11 = tpu.matmul %9, %10, %cst_8 {dimension_numbers = #tpu.dot_dimension_numbers<[1], [0], [0], [1], [0, 0, 1, 1], [], []>} : vector<128x128xbf16>, vector<128x64xbf16>, vector<128x64xf32> -> vector<128x64xf32>
    %c0_9 = arith.constant 0 : index
    %c0_10 = arith.constant 0 : index
    %12 = vector.load %arg6[%c0_9, %c0_10] : memref<1x64xf32, #tpu.memory_space<vmem>>, vector<1x64xf32>
    %13 = vector.broadcast %12 : vector<1x64xf32> to vector<128x64xf32>
    %14 = arith.addf %11, %13 : vector<128x64xf32>
    %cst_11 = arith.constant 0.000000e+00 : f32
    %15 = vector.broadcast %cst_11 : f32 to vector<128x64xf32>
    %16 = arith.maximumf %14, %15 : vector<128x64xf32>
    %17 = arith.truncf %16 : vector<128x64xf32> to vector<128x64xbf16>
    %c0_12 = arith.constant 0 : index
    %c0_13 = arith.constant 0 : index
    %18 = vector.load %arg7[%c0_12, %c0_13] : memref<64x128xbf16, #tpu.memory_space<vmem>>, vector<64x128xbf16>
    %cst_14 = arith.constant dense<0.000000e+00> : vector<128x128xf32>
    %19 = tpu.matmul %17, %18, %cst_14 {dimension_numbers = #tpu.dot_dimension_numbers<[1], [0], [0], [1], [0, 0, 1, 1], [], []>} : vector<128x64xbf16>, vector<64x128xbf16>, vector<128x128xf32> -> vector<128x128xf32>
    %c0_15 = arith.constant 0 : index
    %c0_16 = arith.constant 0 : index
    %20 = vector.load %arg8[%c0_15, %c0_16] : memref<1x128xf32, #tpu.memory_space<vmem>>, vector<1x128xf32>
    %21 = vector.broadcast %20 : vector<1x128xf32> to vector<128x128xf32>
    %22 = arith.addf %19, %21 : vector<128x128xf32>
    %23 = vector.extract_strided_slice %22 {offsets = [0, 0], sizes = [128, 32], strides = [1, 1]} : vector<128x128xf32> to vector<128x32xf32>
    %24 = vector.extract_strided_slice %22 {offsets = [0, 32], sizes = [128, 32], strides = [1, 1]} : vector<128x128xf32> to vector<128x32xf32>
    %cst_17 = arith.constant 5.000000e-01 : f32
    %25 = vector.broadcast %cst_17 : f32 to vector<128x32xf32>
    %26 = arith.mulf %25, %24 : vector<128x32xf32>
    %27 = math.exp %26 : vector<128x32xf32>
    %c0_18 = arith.constant 0 : index
    %c0_19 = arith.constant 0 : index
    %28 = vector.load %arg2[%c0_18, %c0_19] : memref<128x32xf32, #tpu.memory_space<vmem>>, vector<128x32xf32>
    %29 = arith.mulf %28, %27 : vector<128x32xf32>
    %30 = arith.addf %29, %23 : vector<128x32xf32>
    %31 = arith.truncf %30 : vector<128x32xf32> to vector<128x32xbf16>
    %c0_20 = arith.constant 0 : index
    %c0_21 = arith.constant 0 : index
    %32 = vector.load %arg9[%c0_20, %c0_21] : memref<32x64xbf16, #tpu.memory_space<vmem>>, vector<32x64xbf16>
    %cst_22 = arith.constant dense<0.000000e+00> : vector<128x64xf32>
    %33 = tpu.matmul %31, %32, %cst_22 {dimension_numbers = #tpu.dot_dimension_numbers<[1], [0], [0], [1], [0, 0, 1, 1], [], []>} : vector<128x32xbf16>, vector<32x64xbf16>, vector<128x64xf32> -> vector<128x64xf32>
    %c0_23 = arith.constant 0 : index
    %c0_24 = arith.constant 0 : index
    %34 = vector.load %arg10[%c0_23, %c0_24] : memref<1x64xf32, #tpu.memory_space<vmem>>, vector<1x64xf32>
    %35 = vector.broadcast %34 : vector<1x64xf32> to vector<128x64xf32>
    %36 = arith.addf %33, %35 : vector<128x64xf32>
    %cst_25 = arith.constant 0.000000e+00 : f32
    %37 = vector.broadcast %cst_25 : f32 to vector<128x64xf32>
    %38 = arith.maximumf %36, %37 : vector<128x64xf32>
    %39 = arith.truncf %38 : vector<128x64xf32> to vector<128x64xbf16>
    %c0_26 = arith.constant 0 : index
    %c0_27 = arith.constant 0 : index
    %40 = vector.load %arg11[%c0_26, %c0_27] : memref<64x128xbf16, #tpu.memory_space<vmem>>, vector<64x128xbf16>
    %cst_28 = arith.constant dense<0.000000e+00> : vector<128x128xf32>
    %41 = tpu.matmul %39, %40, %cst_28 {dimension_numbers = #tpu.dot_dimension_numbers<[1], [0], [0], [1], [0, 0, 1, 1], [], []>} : vector<128x64xbf16>, vector<64x128xbf16>, vector<128x128xf32> -> vector<128x128xf32>
    %c0_29 = arith.constant 0 : index
    %c0_30 = arith.constant 0 : index
    %42 = vector.load %arg12[%c0_29, %c0_30] : memref<1x128xf32, #tpu.memory_space<vmem>>, vector<1x128xf32>
    %43 = vector.broadcast %42 : vector<1x128xf32> to vector<128x128xf32>
    %44 = arith.addf %41, %43 : vector<128x128xf32>
    %cst_31 = arith.constant 0.000000e+00 : f32
    %45 = vector.broadcast %cst_31 : f32 to vector<128x128xf32>
    %46 = arith.maximumf %44, %45 : vector<128x128xf32>
    %47 = arith.truncf %46 : vector<128x128xf32> to vector<128x128xbf16>
    %c0_32 = arith.constant 0 : index
    %c0_33 = arith.constant 0 : index
    %48 = vector.load %arg13[%c0_32, %c0_33] : memref<128x256xbf16, #tpu.memory_space<vmem>>, vector<128x256xbf16>
    %cst_34 = arith.constant dense<0.000000e+00> : vector<128x256xf32>
    %49 = tpu.matmul %47, %48, %cst_34 {dimension_numbers = #tpu.dot_dimension_numbers<[1], [0], [0], [1], [0, 0, 1, 1], [], []>} : vector<128x128xbf16>, vector<128x256xbf16>, vector<128x256xf32> -> vector<128x256xf32>
    %c0_35 = arith.constant 0 : index
    %c0_36 = arith.constant 0 : index
    %50 = vector.load %arg14[%c0_35, %c0_36] : memref<1x256xf32, #tpu.memory_space<vmem>>, vector<1x256xf32>
    %51 = vector.broadcast %50 : vector<1x256xf32> to vector<128x256xf32>
    %52 = arith.addf %49, %51 : vector<128x256xf32>
    %53 = arith.negf %52 : vector<128x256xf32>
    %54 = math.exp %53 : vector<128x256xf32>
    %cst_37 = arith.constant 1.000000e+00 : f32
    %55 = vector.broadcast %cst_37 : f32 to vector<128x256xf32>
    %56 = arith.addf %55, %54 : vector<128x256xf32>
    %57 = arith.divf %55, %56 : vector<128x256xf32>
    %c0_38 = arith.constant 0 : index
    %c0_39 = arith.constant 0 : index
    %58 = vector.load %arg15[%c0_38, %c0_39] : memref<128x256xf32, #tpu.memory_space<vmem>>, vector<128x256xf32>
    tpu.vector_store %arg15[%c0_38, %c0_39], %57 {strides = array<i32>} : memref<128x256xf32, #tpu.memory_space<vmem>>, vector<128x256xf32>,
    %c0_40 = arith.constant 0 : index
    %c0_41 = arith.constant 0 : index
    %59 = vector.load %arg16[%c0_40, %c0_41] : memref<128x128xf32, #tpu.memory_space<vmem>>, vector<128x128xf32>
    tpu.vector_store %arg16[%c0_40, %c0_41], %22 {strides = array<i32>} : memref<128x128xf32, #tpu.memory_space<vmem>>, vector<128x128xf32>,
    return
  }
  func.func @transform_0(%arg0: i32) -> (i32, i32) {
    %c0_i32 = arith.constant 0 : i32
    %c0_i32_0 = arith.constant 0 : i32
    return %arg0, %c0_i32 : i32, i32
  }
  func.func @transform_1(%arg0: i32) -> (i32, i32) {
    %c0_i32 = arith.constant 0 : i32
    %c0_i32_0 = arith.constant 0 : i32
    return %arg0, %c0_i32 : i32, i32
  }
  func.func @transform_2(%arg0: i32) -> (i32, i32) {
    %c0_i32 = arith.constant 0 : i32
    %c0_i32_0 = arith.constant 0 : i32
    %c0_i32_1 = arith.constant 0 : i32
    return %c0_i32, %c0_i32_0 : i32, i32
  }
  func.func @transform_3(%arg0: i32) -> (i32, i32) {
    %c0_i32 = arith.constant 0 : i32
    %c0_i32_0 = arith.constant 0 : i32
    %c0_i32_1 = arith.constant 0 : i32
    return %c0_i32, %c0_i32_0 : i32, i32
  }
  func.func @transform_4(%arg0: i32) -> (i32, i32) {
    %c0_i32 = arith.constant 0 : i32
    %c0_i32_0 = arith.constant 0 : i32
    %c0_i32_1 = arith.constant 0 : i32
    return %c0_i32, %c0_i32_0 : i32, i32
  }
  func.func @transform_5(%arg0: i32) -> (i32, i32) {
    %c0_i32 = arith.constant 0 : i32
    %c0_i32_0 = arith.constant 0 : i32
    %c0_i32_1 = arith.constant 0 : i32
    return %c0_i32, %c0_i32_0 : i32, i32
  }
  func.func @transform_6(%arg0: i32) -> (i32, i32) {
    %c0_i32 = arith.constant 0 : i32
    %c0_i32_0 = arith.constant 0 : i32
    %c0_i32_1 = arith.constant 0 : i32
    return %c0_i32, %c0_i32_0 : i32, i32
  }
  func.func @transform_7(%arg0: i32) -> (i32, i32) {
    %c0_i32 = arith.constant 0 : i32
    %c0_i32_0 = arith.constant 0 : i32
    %c0_i32_1 = arith.constant 0 : i32
    return %c0_i32, %c0_i32_0 : i32, i32
  }
  func.func @transform_8(%arg0: i32) -> (i32, i32) {
    %c0_i32 = arith.constant 0 : i32
    %c0_i32_0 = arith.constant 0 : i32
    %c0_i32_1 = arith.constant 0 : i32
    return %c0_i32, %c0_i32_0 : i32, i32
  }
  func.func @transform_9(%arg0: i32) -> (i32, i32) {
    %c0_i32 = arith.constant 0 : i32
    %c0_i32_0 = arith.constant 0 : i32
    %c0_i32_1 = arith.constant 0 : i32
    return %c0_i32, %c0_i32_0 : i32, i32
  }
  func.func @transform_10(%arg0: i32) -> (i32, i32) {
    %c0_i32 = arith.constant 0 : i32
    %c0_i32_0 = arith.constant 0 : i32
    %c0_i32_1 = arith.constant 0 : i32
    return %c0_i32, %c0_i32_0 : i32, i32
  }
  func.func @transform_11(%arg0: i32) -> (i32, i32) {
    %c0_i32 = arith.constant 0 : i32
    %c0_i32_0 = arith.constant 0 : i32
    %c0_i32_1 = arith.constant 0 : i32
    return %c0_i32, %c0_i32_0 : i32, i32
  }
  func.func @transform_12(%arg0: i32) -> (i32, i32) {
    %c0_i32 = arith.constant 0 : i32
    %c0_i32_0 = arith.constant 0 : i32
    %c0_i32_1 = arith.constant 0 : i32
    return %c0_i32, %c0_i32_0 : i32, i32
  }
  func.func @transform_13(%arg0: i32) -> (i32, i32) {
    %c0_i32 = arith.constant 0 : i32
    %c0_i32_0 = arith.constant 0 : i32
    %c0_i32_1 = arith.constant 0 : i32
    return %c0_i32, %c0_i32_0 : i32, i32
  }
  func.func @transform_14(%arg0: i32) -> (i32, i32) {
    %c0_i32 = arith.constant 0 : i32
    %c0_i32_0 = arith.constant 0 : i32
    return %arg0, %c0_i32 : i32, i32
  }
  func.func @transform_15(%arg0: i32) -> (i32, i32) {
    %c0_i32 = arith.constant 0 : i32
    %c0_i32_0 = arith.constant 0 : i32
    return %arg0, %c0_i32 : i32, i32
  }
}

</mosaic_0001>

<bundles_post_ra>
// kernel: tpu_custom_call.1
= control target key start
LH: loop header
LB: loop body
LE: loop exit
PB: predicated region body
PF: predicated region fallthrough
CT: control target
= control target key end

     0   :  { %s3891_s0 = inlined_call_operand.hbm [shape: f32[512,256], index: 0, kind: input, shape index: {}]   ;;  %s3892_s1 = inlined_call_operand.vmem [shape: f32[512,32], index: 1, kind: input, shape index: {}]   ;;  %s3893_s2 = inlined_call_operand.vmem [shape: bf16[256,128], index: 2, kind: input, shape index: {}]   ;;  %s3894_s3 = inlined_call_operand.vmem [shape: f32[1,128], index: 3, kind: input, shape index: {}]   ;;  %s3895_s4 = inlined_call_operand.vmem [shape: bf16[128,64], index: 4, kind: input, shape index: {}]   ;;  %s3896_s5 = inlined_call_operand.vmem [shape: f32[1,64], index: 5, kind: input, shape index: {}]   ;;  %s3897_s6 = inlined_call_operand.vmem [shape: bf16[64,128], index: 6, kind: input, shape index: {}]   ;;  %s3898_s7 = inlined_call_operand.vmem [shape: f32[1,128], index: 7, kind: input, shape index: {}]   ;;  %s3899_s8 = inlined_call_operand.vmem [shape: bf16[32,64], index: 8, kind: input, shape index: {}]   ;;  %s3900_s9 = inlined_call_operand.vmem [shape: f32[1,64], index: 9, kind: input, shape index: {}]   ;;  %s3901_s10 = inlined_call_operand.vmem [shape: bf16[64,128], index: 10, kind: input, shape index: {}]   ;;  %s3902_s11 = inlined_call_operand.vmem [shape: f32[1,128], index: 11, kind: input, shape index: {}]   ;;  %s3903_s12 = inlined_call_operand.vmem [shape: bf16[128,256], index: 12, kind: input, shape index: {}]   ;;  %s3904_s13 = inlined_call_operand.vmem [shape: f32[1,256], index: 13, kind: input, shape index: {}]   ;;  %s3905_s14 = inlined_call_operand.hbm [shape: f32[512,256], index: 14, kind: output, shape index: {0}]   ;;  %s3906_s15 = inlined_call_operand.hbm [shape: f32[512,128], index: 15, kind: output, shape index: {1}]  }
   0x1   :  { %3914 = sst [smem:[#allocation15_spill]] %s3904_s13 }
   0x2   :  { %3915 = sst [smem:[#allocation16_spill]] %s3905_s14 }
   0x3   :  { %21 = vsyncpa [#allocation3], 0 }
   0x4   :  { %23 = vsyncpa [#allocation3 + $0x1], 0 }
   0x5   :  { %24 = vsyncpa [#allocation4], 0 }
   0x6   :  { %26 = vsyncpa [#allocation4 + $0x1], 0 }
   0x7   :  { %27 = vsyncpa [#allocation7], 0 }
   0x8   :  { %29 = vsyncpa [#allocation7 + $0x1], 0  ;;  %s3209_s18 = smov 0   ;;  %s3211_s19 = smov 0  }
   0x9   :  { %s3213_s20 = smov 0   ;;  %s3215_s21 = smov 0  }
   0xa LB: > { %3916 = sst [smem:[#allocation11_spill]] %s3104_s18  ;;  %s3230_s22 = sadd.s32 4294967295, %s3116_s21   ;;  %s3116_s21 = sphi %s3215_s21, %s3931_s21   ;;  %s3112_s20 = sphi %s3213_s20, %s3933_s20   ;;  %s3108_s19 = sphi %s3211_s19, %s3935_s19   ;;  %s3104_s18 = sphi %s3209_s18, %s3934_s18  }
   0xb   : > { %3917 = sst [smem:[#allocation12_spill]] %s3112_s20  ;;  %s2343_s23 = sadd.s32 4294967294, %s3116_s21  }
   0xc   : > { %s3234_s24 = sadd.s32 1, %s3116_s21   ;;  %s42_s25 = sadd.s32 1, %s3112_s20 }
   0xd   : > { %3918 = sst [smem:[#allocation13_spill]] %s3234_s24  ;;  %s39_s26 = ssub.s32 %s3116_s21, %s3234_s24 }
   0xe   : > { %p49_p0 = scmp.ne.s32.totalorder %s3112_s20, %s3108_s19  ;;  %p40_p1 = scmp.eq.s32.totalorder %s39_s26, 0 }
   0xf   : > { %p50_p2 = scmp.eq.s32.totalorder %s3116_s21, 0  ;;  %p55_p3 = scmp.ne.s32.totalorder %s3108_s19, %s3104_s18 }
  0x10   : > { %p56_p4 = scmp.eq.s32.totalorder %s3230_s22, 0  ;;  %p357_p7 = scmp.eq.s32.totalorder %s3230_s22, 3 }
  0x11   : > { %s3246_s27 = scalar_select %p40_p1, %s3112_s20, %s42_s25  }
  0x12   : > { %p3248_p5 = por %p50_p2, %p49_p0  ;;  %p3252_p6 = por %p56_p4, %p55_p3 }
  0x13   : > { %3919 = sst [smem:[#allocation14_spill]] %s3246_s27  ;;  %p363_p8 = scmp.eq.s32.totalorder %s2343_s23, 3 }
  0x14   : > { %p2728_p9 = scmp.lt.s32.totalorder %s3116_s21, 4  ;;  %p3258_p10 = por %p357_p7, %p49_p0 }
  0x15   : > { %p3262_p11 = por %p363_p8, %p55_p3  ;;  %s445_s17 = sand.u32 1, %s3112_s20  }
  0x16   : > { %s3922_s30 = scalar_select %p3258_p10, 1, 0 }
  0x17   : > { %s3923_s16 = scalar_select %p3262_p11, 1, 0 }
  0x18   : > { %s2477_s25 = sshll.u32 %s3116_s21, 12  ;;  %s2346_s26 = sshll.u32 %s445_s17, 8 }
  0x19   : > { %s3271_s18 = scalar_lea.hbm %s3891_s0, %s2477_s25  ;;  %s449_s23 = scalar_lea.vmem [#allocation2], %s2346_s26 }
  0x1a   : > { %s457_s14 = sshll.u32 %s449_s23, 4  ;;  %p3275_p12 = pnand %p2728_p9, %p3248_p5  ;;  %s3279_s14 = int_to_ptr.vmem [resolvable:$true] %s457_s14 }
  0x1b   : > { %s3281_s20 = scalar_lea.sflag [#allocation3], %s445_s17  ;;  %s2988_s24 = scalar_lea.hbm %s3271_s18, 4096 }
  0x1c   : > { %p2989_p13 = scmp.ne.s32.totalorder %s3271_s18, %s2988_s24  ;;  %p2990_p0 = pneg %p3275_p12 }
  0x1d   : > { %s2993_s25 = scalar_lea.hbm %s3891_s0, 16384  ;;  %p2994_p3 = scmp.lt.u32.totalorder %s3271_s18, %s3891_s0 }
  0x1e   : > { %p2991_p1 = pnand %p2990_p0, %p2989_p13  ;;  %p2995_p4 = scmp.lt.u32.totalorder %s2993_s25, %s2988_s24 }
  0x1f   : > { %p2997_p7 = scmp.lt.u32.totalorder %s2988_s24, %s3271_s18 }
  0x20   : > { %p2992_p2 = pneg %p2991_p1  ;;  %p2996_p5 = por %p2995_p4, %p2994_p3 }
  0x22   : > { %p2998_p8 = por %p2997_p7, %p2996_p5 }
  0x24   : > { %p2999_p9 = pnand %p2998_p8, %p2992_p2 }
  0x26   : > { %3002 = shalt.err (!%p2999_p9)
}
  0x27   : > { %s3003_s17 = scalar_lea.vmem %s3279_s14, 4096  ;;  %s3118_s27 = smov [#allocation2]  }
  0x28   : > { %p3004_p13 = scmp.ne.s32.totalorder %s3279_s14, %s3003_s17  ;;  %s3008_s28 = sshll.u32 %s3118_s27, 4  ;;  %s3009_s28 = int_to_ptr.vmem [resolvable:$false] %s3008_s28 }
  0x29   : > { %s3010_s26 = scalar_lea.vmem %s3009_s28, 8192  ;;  %p3011_p10 = scmp.lt.s32.totalorder %s3279_s14, %s3009_s28 }
  0x2a   : > { %p3006_p1 = pnand %p3004_p13, %p2990_p0  ;;  %p3012_p3 = scmp.lt.s32.totalorder %s3010_s26, %s3003_s17 }
  0x2c   : > { %p3007_p11 = pneg %p3006_p1  ;;  %p3013_p4 = por %p3012_p3, %p3011_p10 }
  0x2e   : > { %p3014_p5 = pnand %p3013_p4, %p3007_p11 }
  0x30   : > { %3017 = shalt.err (!%p3014_p5)
}
  0x31   : > { %s3119_s24 = smov 256   ;;  %s3120_s25 = smov 16  }
  0x32   : > { %2720 = dma.hbm_to_vmem [thread:$0]  (!%p3275_p12), %s3271_s18, 4096, %s3279_s14, %s3281_s20, %s3119_s24, %s3119_s24, %s3120_s25  }
  0x33   : > { %p2350_p0 = scmp.ge.s32.totalorder %s3116_s21, 1  ;;  %p474_p2 = scmp.lt.s32.totalorder %s3116_s21, 5 }
  0x35   : > { %p475_p7 = pnand %p2350_p0, %p474_p2 }
  0x36   : > { %s3312_s23 = sand.u32 (!%p475_p7), 1, %s3108_s19  }
  0x37   : > { %478 = sbr.rel (%p475_p7) target bundleno = 1665 (0x681), region = 76  ;;  %s3913_s17 = sshll.u32 (!%p475_p7), %s3312_s23, 8 }
  0x38   : > { %s481_s27 = scalar_lea.sflag (!%p475_p7), [#allocation3], %s3312_s23  ;;  %s3318_s28 = scalar_lea.vmem (!%p475_p7), [#allocation2], %s3913_s17 }
  0x3e   : > { %3091 = dma.done.wait (%p3252_p6), %s481_s27, 4096  }
  0x3f   : > { %3093 = vsyncadd (%p3252_p6), %s481_s27, 4294963200  ;;  %v2770_v0 = vld [vmem:[%s3893_s2 + $0x40] sm:$0xff]   ;;  %v2772_v2 = vld [vmem:[%s3893_s2 + $0x48] sm:$0xff]   ;;  %vm1086_vm0 = vcmask 523264   ;;  %s2353_s18 = sshll.u32 %s3312_s23, 7  ;;  %s3121_s26 = smov 96  }
  0x40   : > { %v2771_v1 = vld [vmem:[%s3893_s2] sm:$0xff]   ;;  %2481 = vmatprep.subr.bf16.mxu0 %v2770_v0  ;;  %2695 = vmatprep.subr.bf16.mxu1 %v2770_v0  ;;  %v2773_v3 = vld [vmem:[%s3893_s2 + $0x8] sm:$0xff]   ;;  %v2774_v4 = vld [vmem:[%s3893_s2 + $0x50] sm:$0xff]   ;;  %s3498_s17 = scalar_lea.vmem [#allocation6], %s2353_s18  ;;  %s2354_s18 = sshll.u32 %s3230_s22, 4  ;;  %vm1399_vm1 = vcmask 261120  }
  0x41   : > { %2482 = vmatpush3.bf16.msra.mxu0 %v2771_v1  ;;  %2703 = vmatpush3.bf16.msra.mxu1 %v2771_v1  ;;  %v2775_v5 = vld [vmem:[%s3893_s2 + $0x10] sm:$0xff]   ;;  %v2776_v6 = vld [vmem:[%s3893_s2 + $0x58] sm:$0xff]   ;;  %v2778_v8 = vld [vmem:[%s3893_s2 + $0x60] sm:$0xff]   ;;  %p543_p6 = scmp.lt.s32.totalorder %s2354_s18, 63  ;;  %s2480_s24 = sshll.u32 %s3230_s22, 11 }
  0x42   : > { %2483 = vmatprep.subr.bf16.mxu0 %v2772_v2  ;;  %2696 = vmatprep.subr.bf16.mxu1 %v2772_v2  ;;  %v2777_v7 = vld [vmem:[%s3893_s2 + $0x18] sm:$0xff]   ;;  %v2779_v9 = vld [vmem:[%s3893_s2 + $0x20] sm:$0xff]   ;;  %v2780_v10 = vld [vmem:[%s3893_s2 + $0x68] sm:$0xff]   ;;  %s3738_s27 = scalar_lea.hbm %s3906_s15, %s2480_s24  ;;  %s2196_s13 = scalar_lea.sflag [#allocation7], %s3312_s23 }
  0x43   : > { %v552_v11 = vld [vmem:[%s3318_s28 + $0x8] sm:$0xff]  ;;  %v554_v12 = vld [vmem:[%s3318_s28 + $0x18] sm:$0xff]  ;;  %v2782_v17 = vld [vmem:[%s3893_s2 + $0x70] sm:$0xff]   ;;  %s3937_s18 = smov (!%p543_p6, %s2354_s18), 63  ;;  %p3925_p11 = scmp.ne.s32.totalorder %s3922_s30, 0 }
  0x44   : > { %v584_v13 = vpack.c.bf16 %v554_v12, %v552_v11  ;;  %v2781_v14 = vld [vmem:[%s3893_s2 + $0x28] sm:$0xff]   ;;  %v570_v16 = vld [vmem:[%s3318_s28 + $0x98] sm:$0xff]  ;;  %v2783_v19 = vld [vmem:[%s3893_s2 + $0x30] sm:$0xff]   ;;  %s2355_s20 = sshll.u32 %s3937_s18, 3  ;;  %s3123_s18 = smov [#allocation6]  }
  0x45   : > { %2484 = vmatpush3.bf16.msra.mxu0 %v2773_v3  ;;  %2704 = vmatpush3.bf16.msra.mxu1 %v2773_v3  ;;  %v568_v15 = vld [vmem:[%s3318_s28 + $0x88] sm:$0xff]  ;;  %v2784_v20 = vld [vmem:[%s3893_s2 + $0x78] sm:$0xff]   ;;  %v551_v22 = vld [vmem:[%s3318_s28] sm:$0xff]  ;;  %s3618_s25 = scalar_lea.vmem %s3892_s1, %s2355_s20  ;;  %s3022_s20 = sshll.u32 %s3123_s18, 4  ;;  %s3023_s20 = int_to_ptr.vmem [resolvable:$false] %s3022_s20 }
  0x46   : > { %2485 = vmatprep.subr.bf16.mxu0 %v2774_v4  ;;  %2697 = vmatprep.subr.bf16.mxu1 %v2774_v4  ;;  %v592_v18 = vpack.c.bf16 %v570_v16, %v568_v15  ;;  %v2785_v21 = vld [vmem:[%s3893_s2 + $0x38] sm:$0xff]   ;;  %v553_v23 = vld [vmem:[%s3318_s28 + $0x10] sm:$0xff]  ;;  %v556_v24 = vld [vmem:[%s3318_s28 + $0x28] sm:$0xff] }
  0x47   : > { %766 = vmatprep.mubr.bf16.mxu0 %v584_v13  ;;  %v558_v25 = vld [vmem:[%s3318_s28 + $0x38] sm:$0xff]  ;;  %v567_v26 = vld [vmem:[%s3318_s28 + $0x80] sm:$0xff]  ;;  %v569_v27 = vld [vmem:[%s3318_s28 + $0x90] sm:$0xff]  ;;  %v583_v31 = vpack.c.bf16 %v553_v23, %v551_v22 }
  0x48   : > { %798 = vmatprep.mubr.bf16.mxu1 %v592_v18  ;;  %v572_v28 = vld [vmem:[%s3318_s28 + $0xa8] sm:$0xff]  ;;  %v574_v29 = vld [vmem:[%s3318_s28 + $0xb8] sm:$0xff]  ;;  %v2786_v30 = vld [vmem:[%s3895_s4] sm:$0xff]   ;;  %v586_v32 = vpack.c.bf16 %v558_v25, %v556_v24  ;;  %v591_v33 = vpack.c.bf16 %v569_v27, %v567_v26 }
  0x49   : > { %2486 = vmatpush3.bf16.msra.mxu0 %v2775_v5  ;;  %2705 = vmatpush3.bf16.msra.mxu1 %v2775_v5  ;;  %v2787_v34 = vld [vmem:[%s3895_s4 + $0x8] sm:$0xff]   ;;  %v594_v35 = vpack.c.bf16 %v574_v29, %v572_v28  ;;  %v555_v36 = vld [vmem:[%s3318_s28 + $0x20] sm:$0xff]  ;;  %v557_v37 = vld [vmem:[%s3318_s28 + $0x30] sm:$0xff] }
  0x4a   : > { %2487 = vmatprep.subr.bf16.mxu0 %v2776_v6  ;;  %2698 = vmatprep.subr.bf16.mxu1 %v2776_v6  ;;  %v560_v38 = vld [vmem:[%s3318_s28 + $0x48] sm:$0xff]  ;;  %v562_v39 = vld [vmem:[%s3318_s28 + $0x58] sm:$0xff]  ;;  %v571_v40 = vld [vmem:[%s3318_s28 + $0xa0] sm:$0xff]  ;;  %v585_v45 = vpack.c.bf16 %v557_v37, %v555_v36 }
  0x4b   : > { %v573_v41 = vld [vmem:[%s3318_s28 + $0xb0] sm:$0xff]  ;;  %v576_v42 = vld [vmem:[%s3318_s28 + $0xc8] sm:$0xff]  ;;  %v578_v43 = vld [vmem:[%s3318_s28 + $0xd8] sm:$0xff]  ;;  %v588_v46 = vpack.c.bf16 %v562_v39, %v560_v38 }
  0x4c   : > { %v2788_v44 = vld [vmem:[%s3895_s4 + $0x10] sm:$0xff]   ;;  %v593_v47 = vpack.c.bf16 %v573_v41, %v571_v40  ;;  %v596_v48 = vpack.c.bf16 %v578_v43, %v576_v42  ;;  %v559_v49 = vld [vmem:[%s3318_s28 + $0x40] sm:$0xff]  ;;  %v564_v51 = vld [vmem:[%s3318_s28 + $0x68] sm:$0xff] }
  0x4d   : > { %2488 = vmatpush3.bf16.msra.mxu0 %v2777_v7  ;;  %2706 = vmatpush3.bf16.msra.mxu1 %v2777_v7  ;;  %v561_v50 = vld [vmem:[%s3318_s28 + $0x50] sm:$0xff]  ;;  %v566_v52 = vld [vmem:[%s3318_s28 + $0x78] sm:$0xff]  ;;  %v575_v53 = vld [vmem:[%s3318_s28 + $0xc0] sm:$0xff] }
  0x4e   : > { %2489 = vmatprep.subr.bf16.mxu0 %v2778_v8  ;;  %2699 = vmatprep.subr.bf16.mxu1 %v2778_v8  ;;  %v577_v54 = vld [vmem:[%s3318_s28 + $0xd0] sm:$0xff]  ;;  %v580_v55 = vld [vmem:[%s3318_s28 + $0xe8] sm:$0xff]  ;;  %v582_v56 = vld [vmem:[%s3318_s28 + $0xf8] sm:$0xff]  ;;  %v587_v57 = vpack.c.bf16 %v561_v50, %v559_v49  ;;  %v590_v58 = vpack.c.bf16 %v566_v52, %v564_v51 }
  0x4f   : > { %v595_v59 = vpack.c.bf16 %v577_v54, %v575_v53  ;;  %v598_v60 = vpack.c.bf16 %v582_v56, %v580_v55  ;;  %v563_v61 = vld [vmem:[%s3318_s28 + $0x60] sm:$0xff]  ;;  %v565_v62 = vld [vmem:[%s3318_s28 + $0x70] sm:$0xff]  ;;  %v2789_v3 = vld [vmem:[%s3895_s4 + $0x18] sm:$0xff]  }
  0x50   : > { %v579_v63 = vld [vmem:[%s3318_s28 + $0xe0] sm:$0xff]  ;;  %v581_v0 = vld [vmem:[%s3318_s28 + $0xf0] sm:$0xff]  ;;  %v589_v1 = vpack.c.bf16 %v565_v62, %v563_v61  ;;  %v2791_v5 = vld [vmem:[%s3895_s4 + $0x28] sm:$0xff]  }
  0x51   : > { %2490 = vmatpush3.bf16.msra.mxu0 %v2779_v9  ;;  %2707 = vmatpush3.bf16.msra.mxu1 %v2779_v9  ;;  %v597_v2 = vpack.c.bf16 %v581_v0, %v579_v63  ;;  %v2790_v4 = vld [vmem:[%s3895_s4 + $0x20] sm:$0xff]   ;;  %v2792_v6 = vld [vmem:[%s3895_s4 + $0x30] sm:$0xff]   ;;  %v2793_v7 = vld [vmem:[%s3895_s4 + $0x38] sm:$0xff]  }
  0x52   : > { %2491 = vmatprep.subr.bf16.mxu0 %v2780_v10  ;;  %2700 = vmatprep.subr.bf16.mxu1 %v2780_v10  ;;  %v3431_v8 = vld [vmem:[%s3897_s6] sm:$0xff]  }
  0x53   : > { %v3437_v10 = vld [vmem:[%s3894_s3] ss:$0 sm:$0xff] }
  0x55   : > { %2492 = vmatpush3.bf16.msra.mxu0 %v2781_v14  ;;  %2708 = vmatpush3.bf16.msra.mxu1 %v2781_v14 }
  0x56   : > { %2493 = vmatprep.subr.bf16.mxu0 %v2782_v17  ;;  %2701 = vmatprep.subr.bf16.mxu1 %v2782_v17 }
  0x59   : > { %2494 = vmatpush3.bf16.msra.mxu0 %v2783_v19  ;;  %2709 = vmatpush3.bf16.msra.mxu1 %v2783_v19 }
  0x5a   : > { %2495 = vmatprep.subr.bf16.mxu0 %v2784_v20  ;;  %2702 = vmatprep.subr.bf16.mxu1 %v2784_v20 }
  0x5d   : > { %2496 = vmatpush3.bf16.msra.mxu0 %v2785_v21  ;;  %2710 = vmatpush3.bf16.msra.mxu1 %v2785_v21 }
  0x5e   : > { %2595 = vmatprep.subr.bf16.mxu1 %v2786_v30 }
  0x60   : > { %767 = vmatmul.mubr.bf16.vlgmr.msra.gmra.mrb[0].mxu0 %v583_v31  ;;  %799 = vmatmul.mubr.bf16.vlgmr.msra.gmra.mrb[0].mxu1 %v591_v33 }
  0x61   : > { %774 = vmatprep.mubr.bf16.mxu0 %v586_v32  ;;  %806 = vmatprep.mubr.bf16.mxu1 %v594_v35 }
  0x62   : > { %2596 = vmatpush3.bf16.msra.mxu1 %v2786_v30 }
  0x63   : > { %2597 = vmatprep.subr.bf16.mxu1 %v2787_v34 }
  0x66   : > { %2598 = vmatpush3.bf16.msra.mxu1 %v2787_v34 }
  0x67   : > { %2599 = vmatprep.subr.bf16.mxu1 %v2788_v44 }
  0x68   : > { %775 = vmatmul.mubr.bf16.gmra.mrb[4].mxu0 %v585_v45  ;;  %807 = vmatmul.mubr.bf16.gmra.mrb[4].mxu1 %v593_v47 }
  0x69   : > { %782 = vmatprep.mubr.bf16.mxu0 %v588_v46  ;;  %814 = vmatprep.mubr.bf16.mxu1 %v596_v48 }
  0x6a   : > { %2600 = vmatpush3.bf16.msra.mxu1 %v2788_v44 }
  0x6b   : > { %2601 = vmatprep.subr.bf16.mxu1 %v2789_v3 }
  0x6e   : > { %2602 = vmatpush3.bf16.msra.mxu1 %v2789_v3 }
  0x6f   : > { %2603 = vmatprep.subr.bf16.mxu1 %v2790_v4 }
  0x70   : > { %783 = vmatmul.mubr.bf16.gmra.mrb[8].mxu0 %v587_v57  ;;  %815 = vmatmul.mubr.bf16.gmra.mrb[8].mxu1 %v595_v59  ;;  %v2795_v59 = vld [vmem:[%s3897_s6 + $0x8] sm:$0xff]  }
  0x71   : > { %790 = vmatprep.mubr.bf16.mxu0 %v590_v58  ;;  %822 = vmatprep.mubr.bf16.mxu1 %v598_v60 }
  0x72   : > { %2604 = vmatpush3.bf16.msra.mxu1 %v2790_v4 }
  0x73   : > { %2605 = vmatprep.subr.bf16.mxu1 %v2791_v5 }
  0x76   : > { %2606 = vmatpush3.bf16.msra.mxu1 %v2791_v5 }
  0x77   : > { %2607 = vmatprep.subr.bf16.mxu1 %v2792_v6 }
  0x78   : > { %791 = vmatmul.mubr.bf16.gmra.mrb[12].mxu0 %v589_v1  ;;  %823 = vmatmul.mubr.bf16.gmra.mrb[12].mxu1 %v597_v2 }
  0x7a   : > { %2608 = vmatpush3.bf16.msra.mxu1 %v2792_v6  ;;  %v2796_v6 = vld [vmem:[%s3897_s6 + $0x10] sm:$0xff]  }
  0x7b   : > { %2609 = vmatprep.subr.bf16.mxu1 %v2793_v7 }
  0x7e   : > { %2610 = vmatpush3.bf16.msra.mxu1 %v2793_v7 }
  0x7f   : > { %2627 = vmatprep.subr.bf16.mxu1 %v3431_v8 }
 0x133   : > { %v2497_v9 = vpop.f32.mrb[0].mxu0  ;;  %v2521_v12 = vpop.f32.mrb[0].mxu1 }
 0x134   : > { %v2498_v11 = vpop.f32.mrb[1].mxu0  ;;  %v2522_v15 = vpop.f32.mrb[1].mxu1 }
 0x135   : > { %v2499_v13 = vadd.f32 %v2498_v11, %v2497_v9  ;;  %v2500_v14 = vpop.f32.mrb[2].mxu0  ;;  %v2523_v17 = vadd.f32 %v2522_v15, %v2521_v12  ;;  %v2524_v18 = vpop.f32.mrb[2].mxu1 }
 0x136   : > { %v2501_v16 = vpop.f32.mrb[3].mxu0  ;;  %v2525_v21 = vpop.f32.mrb[3].mxu1 }
 0x137   : > { %v769_v19 = vadd.f32 %v2499_v13, %v3437_v10  ;;  %v2502_v20 = vadd.f32 %v2501_v16, %v2500_v14  ;;  %v801_v22 = vadd.f32 %v2523_v17, %v3437_v10  ;;  %v2526_v23 = vadd.f32 %v2525_v21, %v2524_v18 }
 0x139   : > { %v772_v24 = vadd.f32 %v2502_v20, %v3437_v10  ;;  %v839_v25 = vmax.f32 %v801_v22, 0.0  ;;  %v804_v26 = vadd.f32 %v2526_v23, %v3437_v10  ;;  %v831_v27 = vmax.f32 %v769_v19, 0.0 }
 0x13b   : > { %v832_v28 = vmax.f32 %v772_v24, 0.0  ;;  %v2503_v29 = vpop.f32.mrb[4].mxu0  ;;  %v840_v31 = vmax.f32 %v804_v26, 0.0  ;;  %v2527_v32 = vpop.f32.mrb[4].mxu1 }
 0x13c   : > { %v2504_v30 = vpop.f32.mrb[5].mxu0  ;;  %v2528_v36 = vpop.f32.mrb[5].mxu1 }
 0x13d   : > { %v2505_v33 = vadd.f32 %v2504_v30, %v2503_v29  ;;  %v2506_v34 = vpop.f32.mrb[6].mxu0  ;;  %v847_v35 = vpack.c.bf16 %v832_v28, %v831_v27  ;;  %v2529_v38 = vadd.f32 %v2528_v36, %v2527_v32  ;;  %v2530_v39 = vpop.f32.mrb[6].mxu1  ;;  %v3443_v40 = vpack.c.bf16 %v840_v31, %v839_v25 }
 0x13e   : > { %v2507_v37 = vpop.f32.mrb[7].mxu0  ;;  %v2531_v43 = vpop.f32.mrb[7].mxu1 }
 0x13f   : > { %v777_v41 = vadd.f32 %v2505_v33, %v3437_v10  ;;  %v2508_v42 = vadd.f32 %v2507_v37, %v2506_v34  ;;  %2611 = vmatprep.mubr.bf16.mxu1 %v847_v35  ;;  %v809_v44 = vadd.f32 %v2529_v38, %v3437_v10  ;;  %v2532_v45 = vadd.f32 %v2531_v43, %v2530_v39  ;;  %v2797_v37 = vld [vmem:[%s3897_s6 + $0x18] sm:$0xff]  }
 0x141   : > { %v780_v46 = vadd.f32 %v2508_v42, %v3437_v10  ;;  %v841_v47 = vmax.f32 %v809_v44, 0.0  ;;  %v812_v48 = vadd.f32 %v2532_v45, %v3437_v10  ;;  %v833_v49 = vmax.f32 %v777_v41, 0.0 }
 0x143   : > { %v834_v50 = vmax.f32 %v780_v46, 0.0  ;;  %v2509_v51 = vpop.f32.mrb[8].mxu0  ;;  %v842_v53 = vmax.f32 %v812_v48, 0.0  ;;  %v2533_v54 = vpop.f32.mrb[8].mxu1 }
 0x144   : > { %v2510_v52 = vpop.f32.mrb[9].mxu0  ;;  %v2534_v58 = vpop.f32.mrb[9].mxu1 }
 0x145   : > { %v848_v55 = vpack.c.bf16 %v834_v50, %v833_v49  ;;  %v2511_v56 = vadd.f32 %v2510_v52, %v2509_v51  ;;  %v2512_v57 = vpop.f32.mrb[10].mxu0  ;;  %v2535_v61 = vadd.f32 %v2534_v58, %v2533_v54  ;;  %v2536_v62 = vpop.f32.mrb[10].mxu1  ;;  %v852_v63 = vpack.c.bf16 %v842_v53, %v841_v47 }
 0x146   : > { %v2513_v60 = vpop.f32.mrb[11].mxu0  ;;  %v2537_v2 = vpop.f32.mrb[11].mxu1 }
 0x147   : > { %v785_v0 = vadd.f32 %v2511_v56, %v3437_v10  ;;  %v2514_v1 = vadd.f32 %v2513_v60, %v2512_v57  ;;  %2612 = vmatmul.mubr.bf16.vlgmr.msra.gmra.mrb[16].mxu1 %v848_v55  ;;  %v817_v3 = vadd.f32 %v2535_v61, %v3437_v10  ;;  %v2538_v4 = vadd.f32 %v2537_v2, %v2536_v62 }
 0x148   : > { %2628 = vmatpush3.bf16.msra.mxu1 %v3431_v8 }
 0x149   : > { %v788_v5 = vadd.f32 %v2514_v1, %v3437_v10  ;;  %2629 = vmatprep.subr.bf16.mxu1 %v2795_v59  ;;  %v843_v7 = vmax.f32 %v817_v3, 0.0  ;;  %v820_v9 = vadd.f32 %v2538_v4, %v3437_v10  ;;  %v835_v11 = vmax.f32 %v785_v0, 0.0 }
 0x14b   : > { %v836_v12 = vmax.f32 %v788_v5, 0.0  ;;  %v2515_v13 = vpop.f32.mrb[12].mxu0  ;;  %v844_v15 = vmax.f32 %v820_v9, 0.0  ;;  %v2539_v16 = vpop.f32.mrb[12].mxu1 }
 0x14c   : > { %v2516_v14 = vpop.f32.mrb[13].mxu0  ;;  %2630 = vmatpush3.bf16.msra.mxu1 %v2795_v59  ;;  %v2540_v19 = vpop.f32.mrb[13].mxu1 }
 0x14d   : > { %v2517_v17 = vadd.f32 %v2516_v14, %v2515_v13  ;;  %v2518_v18 = vpop.f32.mrb[14].mxu0  ;;  %v849_v8 = vpack.c.bf16 %v836_v12, %v835_v11  ;;  %2631 = vmatprep.subr.bf16.mxu1 %v2796_v6  ;;  %v2541_v21 = vadd.f32 %v2540_v19, %v2539_v16  ;;  %v2542_v22 = vpop.f32.mrb[14].mxu1  ;;  %v853_v23 = vpack.c.bf16 %v844_v15, %v843_v7 }
 0x14e   : > { %v2519_v20 = vpop.f32.mrb[15].mxu0  ;;  %v2543_v26 = vpop.f32.mrb[15].mxu1 }
 0x14f   : > { %v793_v24 = vadd.f32 %v2517_v17, %v3437_v10  ;;  %v2520_v25 = vadd.f32 %v2519_v20, %v2518_v18  ;;  %2615 = vmatprep.mubr.bf16.mxu1 %v849_v8  ;;  %v825_v27 = vadd.f32 %v2541_v21, %v3437_v10  ;;  %v2544_v28 = vadd.f32 %v2543_v26, %v2542_v22 }
 0x150   : > { %2632 = vmatpush3.bf16.msra.mxu1 %v2796_v6 }
 0x151   : > { %v796_v29 = vadd.f32 %v2520_v25, %v3437_v10  ;;  %v845_v30 = vmax.f32 %v825_v27, 0.0  ;;  %v828_v31 = vadd.f32 %v2544_v28, %v3437_v10  ;;  %v837_v32 = vmax.f32 %v793_v24, 0.0  ;;  %2633 = vmatprep.subr.bf16.mxu1 %v2797_v37  ;;  %v2373_v10 = vld [vmem:[%s3896_s5] ss:$0 sm:$0xff] }
 0x153   : > { %v838_v33 = vmax.f32 %v796_v29, 0.0  ;;  %v846_v34 = vmax.f32 %v828_v31, 0.0  ;;  %v2798_v31 = vld [vmem:[%s3899_s8] sm:$0xff]  }
 0x154   : > { %2634 = vmatpush3.bf16.msra.mxu1 %v2797_v37  ;;  %2651 = vmatprep.subr.bf16.mxu0 %v2798_v31 }
 0x155   : > { %v850_v35 = vpack.c.bf16 %v838_v33, %v837_v32  ;;  %v854_v36 = vpack.c.bf16 %v846_v34, %v845_v30  ;;  %v2799_v32 = vld [vmem:[%s3899_s8 + $0x8] sm:$0xff]   ;;  %2652 = vmatpush3.bf16.msra.mxu0 %v2798_v31  ;;  %v3489_v33 = vld [vmem:[%s3898_s7] ss:$0 sm:$0xff] }
 0x156   : > { %2653 = vmatprep.subr.bf16.mxu0 %v2799_v32 }
 0x157   : > { %2616 = vmatmul.mubr.bf16.gmra.mrb[20].mxu1 %v850_v35 }
 0x158   : > { %2619 = vmatprep.mubr.bf16.mxu1 %v3443_v40 }
 0x159   : > { %2654 = vmatpush3.bf16.msra.mxu0 %v2799_v32 }
 0x15f   : > { %2620 = vmatmul.mubr.bf16.gmra.mrb[24].mxu1 %v852_v63 }
 0x160   : > { %2623 = vmatprep.mubr.bf16.mxu1 %v853_v23 }
 0x167   : > { %2624 = vmatmul.mubr.bf16.gmra.mrb[28].mxu1 %v854_v36 }
 0x21a   : > { %v2613_v38 = vpop.f32.mrb[16].mxu1 }
 0x21b   : > { %v969_v39 = vadd.f32 %v2613_v38, %v2373_v10  ;;  %v960_v41 = vpop.f32.mrb[17].mxu1 }
 0x21c   : > { %v961_v42 = vadd.f32 %v2373_v10, %v960_v41  ;;  %v2614_v43 = vpop.f32.mrb[18].mxu1 }
 0x21d   : > { %v972_v44 = vadd.f32 %v2614_v43, %v2373_v10  ;;  %v963_v40 = vpop.f32.mrb[19].mxu1  ;;  %v1025_v46 = vmax.f32 %v969_v39, 0.0 }
 0x21e   : > { %v964_v45 = vadd.f32 %v2373_v10, %v963_v40  ;;  %v1023_v48 = vmax.f32 %v961_v42, 0.0 }
 0x21f   : > { %v1026_v47 = vmax.f32 %v972_v44, 0.0 }
 0x220   : > { %v1024_v49 = vmax.f32 %v964_v45, 0.0 }
 0x221   : > { %v1040_v50 = vpack.c.bf16 %v1026_v47, %v1025_v46 }
 0x222   : > { %v1039_v51 = vpack.c.bf16 %v1024_v49, %v1023_v48 }
 0x224   : > { %2635 = vmatprep.mubr.msk.bf16.mxu1 %vm1086_vm0, %v1039_v51 }
 0x225   : > { %2636 = vmatmul.mubr.msk.bf16.vlgmr.msra.gmra.mrb[32].mxu1 %vm1086_vm0, %v1040_v50 }
 0x22a   : > { %v2617_v52 = vpop.f32.mrb[20].mxu1 }
 0x22b   : > { %v985_v53 = vadd.f32 %v2617_v52, %v2373_v10  ;;  %v976_v54 = vpop.f32.mrb[21].mxu1 }
 0x22c   : > { %v977_v55 = vadd.f32 %v2373_v10, %v976_v54  ;;  %v2618_v56 = vpop.f32.mrb[22].mxu1 }
 0x22d   : > { %v988_v57 = vadd.f32 %v2618_v56, %v2373_v10  ;;  %v979_v58 = vpop.f32.mrb[23].mxu1  ;;  %v1029_v60 = vmax.f32 %v985_v53, 0.0 }
 0x22e   : > { %v980_v59 = vadd.f32 %v2373_v10, %v979_v58  ;;  %v1027_v62 = vmax.f32 %v977_v55, 0.0 }
 0x22f   : > { %v1030_v61 = vmax.f32 %v988_v57, 0.0 }
 0x230   : > { %v1028_v63 = vmax.f32 %v980_v59, 0.0 }
 0x231   : > { %v1042_v0 = vpack.c.bf16 %v1030_v61, %v1029_v60 }
 0x232   : > { %v1041_v1 = vpack.c.bf16 %v1028_v63, %v1027_v62  ;;  %v2621_v2 = vpop.f32.mrb[24].mxu1 }
 0x233   : > { %v1001_v3 = vadd.f32 %v2621_v2, %v2373_v10  ;;  %v992_v4 = vpop.f32.mrb[25].mxu1 }
 0x234   : > { %v993_v5 = vadd.f32 %v2373_v10, %v992_v4  ;;  %v2622_v6 = vpop.f32.mrb[26].mxu1  ;;  %2639 = vmatprep.mubr.msk.bf16.mxu1 %vm1086_vm0, %v1041_v1 }
 0x235   : > { %v1033_v7 = vmax.f32 %v1001_v3, 0.0  ;;  %v1004_v9 = vadd.f32 %v2622_v6, %v2373_v10  ;;  %v995_v11 = vpop.f32.mrb[27].mxu1  ;;  %2640 = vmatmul.mubr.msk.bf16.gmra.mrb[36].mxu1 %vm1086_vm0, %v1042_v0 }
 0x236   : > { %v1031_v12 = vmax.f32 %v993_v5, 0.0  ;;  %v996_v13 = vadd.f32 %v2373_v10, %v995_v11 }
 0x237   : > { %v1034_v14 = vmax.f32 %v1004_v9, 0.0 }
 0x238   : > { %v1032_v15 = vmax.f32 %v996_v13, 0.0 }
 0x239   : > { %v1044_v16 = vpack.c.bf16 %v1034_v14, %v1033_v7 }
 0x23a   : > { %v1043_v17 = vpack.c.bf16 %v1032_v15, %v1031_v12  ;;  %v2625_v18 = vpop.f32.mrb[28].mxu1 }
 0x23b   : > { %v1017_v8 = vadd.f32 %v2625_v18, %v2373_v10  ;;  %v1008_v19 = vpop.f32.mrb[29].mxu1 }
 0x23c   : > { %v1009_v20 = vadd.f32 %v2373_v10, %v1008_v19  ;;  %v2626_v21 = vpop.f32.mrb[30].mxu1  ;;  %2643 = vmatprep.mubr.msk.bf16.mxu1 %vm1086_vm0, %v1043_v17 }
 0x23d   : > { %v1037_v22 = vmax.f32 %v1017_v8, 0.0  ;;  %v1020_v23 = vadd.f32 %v2626_v21, %v2373_v10  ;;  %v1011_v24 = vpop.f32.mrb[31].mxu1  ;;  %2644 = vmatmul.mubr.msk.bf16.gmra.mrb[40].mxu1 %vm1086_vm0, %v1044_v16 }
 0x23e   : > { %v1035_v25 = vmax.f32 %v1009_v20, 0.0  ;;  %v1012_v26 = vadd.f32 %v2373_v10, %v1011_v24 }
 0x23f   : > { %v1038_v27 = vmax.f32 %v1020_v23, 0.0 }
 0x240   : > { %v1036_v28 = vmax.f32 %v1012_v26, 0.0 }
 0x241   : > { %v1046_v29 = vpack.c.bf16 %v1038_v27, %v1037_v22 }
 0x242   : > { %v1045_v30 = vpack.c.bf16 %v1036_v28, %v1035_v25 }
 0x244   : > { %2647 = vmatprep.mubr.msk.bf16.mxu1 %vm1086_vm0, %v1045_v30 }
 0x245   : > { %2648 = vmatmul.mubr.msk.bf16.gmra.mrb[44].mxu1 %vm1086_vm0, %v1046_v29 }
 0x2f8   : > { %v2637_v34 = vpop.f32.mrb[32].mxu1 }
 0x2f9   : > { %v3492_v35 = vadd.f32 %v2637_v34, %v3489_v33  ;;  %v1145_v36 = vpop.f32.mrb[33].mxu1 }
 0x2fa   : > { %v3495_v37 = vadd.f32 %v3489_v33, %v1145_v36  ;;  %v2638_v10 = vpop.f32.mrb[34].mxu1 }
 0x2fb   : > { %v1210_v38 = vmul.f32 0.5, %v3492_v35  ;;  %2176 = vst [vmem:[%s3498_s17 + $0x10] sm:$0xff] %v3492_v35  ;;  %v3503_v39 = vadd.f32 %v2638_v10, %v3489_v33  ;;  %v1148_v41 = vpop.f32.mrb[35].mxu1 }
 0x2fc   : > { %v1208_v42 = vmul.f32 0.5, %v3495_v37  ;;  %2174 = vst [vmem:[%s3498_s17] sm:$0xff] %v3495_v37  ;;  %v3509_v43 = vadd.f32 %v3489_v33, %v1148_v41 }
 0x2fd   : > { %v1228_v44 = vmul.f32 1.442695, %v1210_v38  ;;  %v1211_v40 = vmul.f32 0.5, %v3503_v39  ;;  %2177 = vst [vmem:[%s3498_s17 + $0x18] sm:$0xff] %v3503_v39 }
 0x2fe   : > { %v1224_v45 = vmul.f32 1.442695, %v1208_v42  ;;  %v1209_v46 = vmul.f32 0.5, %v3509_v43  ;;  %2175 = vst [vmem:[%s3498_s17 + $0x8] sm:$0xff] %v3509_v43 }
 0x2ff   : > { %2828 = vpow2.f32 %v1228_v44  ;;  %v1230_v47 = vmul.f32 1.442695, %v1211_v40 }
 0x300   : > { %2830 = vpow2.f32 %v1224_v45  ;;  %v1226_v48 = vmul.f32 1.442695, %v1209_v46 }
 0x301   : > { %2832 = vpow2.f32 %v1230_v47 }
 0x302   : > { %2834 = vpow2.f32 %v1226_v48 }
 0x308   : > { %v2641_v49 = vpop.f32.mrb[36].mxu1 }
 0x309   : > { %v2829_v50 = vpop.eup %2828  ;;  %v3518_v51 = vadd.f32 %v2641_v49, %v3489_v33  ;;  %v1161_v52 = vpop.f32.mrb[37].mxu1 }
 0x30a   : > { %v2831_v53 = vpop.eup %2830  ;;  %v3521_v54 = vadd.f32 %v3489_v33, %v1161_v52  ;;  %1292 = vrot.lane.b32.xlu1 %v2829_v50, %s3121_s26  ;;  %v2642_v55 = vpop.f32.mrb[38].mxu1  ;;  %v2800_v50 = vld [vmem:[%s3901_s10] sm:$0xff]   ;;  %v2801_v52 = vld [vmem:[%s3901_s10 + $0x8] sm:$0xff]  }
 0x30b   : > { %2180 = vst [vmem:[%s3498_s17 + $0x30] sm:$0xff] %v3518_v51  ;;  %v3527_v56 = vadd.f32 %v2642_v55, %v3489_v33  ;;  %v1164_v57 = vpop.f32.mrb[39].mxu1  ;;  %1288 = vrot.lane.b32.xlu0 %v2831_v53, %s3121_s26  ;;  %v1214_v58 = vmul.f32 0.5, %v3518_v51  ;;  %v2833_v61 = vpop.eup %2832  ;;  %2671 = vmatprep.subr.bf16.mxu1 %v2800_v50 }
 0x30c   : > { %v1212_v59 = vmul.f32 0.5, %v3521_v54  ;;  %2178 = vst [vmem:[%s3498_s17 + $0x20] sm:$0xff] %v3521_v54  ;;  %v3535_v60 = vadd.f32 %v3489_v33, %v1164_v57  ;;  %v2835_v62 = vpop.eup %2834  ;;  %2672 = vmatpush3.bf16.msra.mxu1 %v2800_v50 }
 0x30d   : > { %2181 = vst [vmem:[%s3498_s17 + $0x38] sm:$0xff] %v3527_v56  ;;  %v1215_v0 = vmul.f32 0.5, %v3527_v56  ;;  %v1236_v2 = vmul.f32 1.442695, %v1214_v58  ;;  %2673 = vmatprep.subr.bf16.mxu1 %v2801_v52  ;;  %v2802_v58 = vld [vmem:[%s3901_s10 + $0x10] sm:$0xff]  }
 0x30e   : > { %v1232_v63 = vmul.f32 1.442695, %v1212_v59  ;;  %v1213_v1 = vmul.f32 0.5, %v3535_v60  ;;  %2179 = vst [vmem:[%s3498_s17 + $0x28] sm:$0xff] %v3535_v60  ;;  %1294 = vrot.lane.b32.xlu1 %v2833_v61, %s3121_s26  ;;  %v1256_v61 = vld [vmem:[%s3618_s25] sm:$0xff] }
 0x30f   : > { %1290 = vrot.lane.b32.xlu0 %v2835_v62, %s3121_s26  ;;  %v1238_v7 = vmul.f32 1.442695, %v1215_v0  ;;  %v1259_v0 = vld [vmem:[%s3618_s25 + $0x18] sm:$0xff] }
 0x310   : > { %2836 = vpow2.f32 %v1232_v63  ;;  %v1234_v3 = vmul.f32 1.442695, %v1213_v1  ;;  %v2645_v4 = vpop.f32.mrb[40].mxu1  ;;  %2674 = vmatpush3.bf16.msra.mxu1 %v2801_v52  ;;  %v1258_v63 = vld [vmem:[%s3618_s25 + $0x10] sm:$0xff]  ;;  %v1257_v1 = vld [vmem:[%s3618_s25 + $0x8] sm:$0xff] }
 0x311   : > { %v3546_v5 = vadd.f32 %v2645_v4, %v3489_v33  ;;  %v1177_v6 = vpop.f32.mrb[41].mxu1  ;;  %2675 = vmatprep.subr.bf16.mxu1 %v2802_v58 }
 0x312   : > { %2838 = vpow2.f32 %v1234_v3  ;;  %v3549_v9 = vadd.f32 %v3489_v33, %v1177_v6  ;;  %v2646_v11 = vpop.f32.mrb[42].mxu1 }
 0x313   : > { %2184 = vst [vmem:[%s3498_s17 + $0x50] sm:$0xff] %v3546_v5  ;;  %v3554_v12 = vadd.f32 %v2646_v11, %v3489_v33  ;;  %v1180_v13 = vpop.f32.mrb[43].mxu1  ;;  %2840 = vpow2.f32 %v1236_v2  ;;  %v1218_v14 = vmul.f32 0.5, %v3546_v5 }
 0x314   : > { %v1216_v15 = vmul.f32 0.5, %v3549_v9  ;;  %2182 = vst [vmem:[%s3498_s17 + $0x40] sm:$0xff] %v3549_v9  ;;  %v3561_v16 = vadd.f32 %v3489_v33, %v1180_v13  ;;  %2842 = vpow2.f32 %v1238_v7  ;;  %2676 = vmatpush3.bf16.msra.mxu1 %v2802_v58 }
 0x315   : > { %2185 = vst [vmem:[%s3498_s17 + $0x58] sm:$0xff] %v3554_v12  ;;  %v1219_v18 = vmul.f32 0.5, %v3554_v12  ;;  %v1244_v19 = vmul.f32 1.442695, %v1218_v14 }
 0x316   : > { %v1240_v17 = vmul.f32 1.442695, %v1216_v15  ;;  %v1217_v8 = vmul.f32 0.5, %v3561_v16  ;;  %2183 = vst [vmem:[%s3498_s17 + $0x48] sm:$0xff] %v3561_v16 }
 0x317   : > { %v1246_v25 = vmul.f32 1.442695, %v1219_v18 }
 0x318   : > { %2844 = vpow2.f32 %v1240_v17  ;;  %v1242_v20 = vmul.f32 1.442695, %v1217_v8  ;;  %v2649_v21 = vpop.f32.mrb[44].mxu1 }
 0x319   : > { %v3570_v22 = vadd.f32 %v2649_v21, %v3489_v33  ;;  %v1193_v23 = vpop.f32.mrb[45].mxu1  ;;  %v1261_v21 = vld [vmem:[%s3618_s25 + $0x28] sm:$0xff] }
 0x31a   : > { %v2837_v24 = vpop.eup %2836  ;;  %2846 = vpow2.f32 %v1242_v20  ;;  %v3573_v26 = vadd.f32 %v3489_v33, %v1193_v23  ;;  %v2650_v27 = vpop.f32.mrb[46].mxu1 }
 0x31b   : > { %v1222_v28 = vmul.f32 0.5, %v3570_v22  ;;  %2188 = vst [vmem:[%s3498_s17 + $0x70] sm:$0xff] %v3570_v22  ;;  %v3579_v29 = vadd.f32 %v2650_v27, %v3489_v33  ;;  %v1196_v30 = vpop.f32.mrb[47].mxu1  ;;  %1296 = vrot.lane.b32.xlu0 %v2837_v24, %s3121_s26  ;;  %2848 = vpow2.f32 %v1244_v19  ;;  %v1260_v19 = vld [vmem:[%s3618_s25 + $0x20] sm:$0xff] }
 0x31c   : > { %v2839_v31 = vpop.eup %2838  ;;  %v1220_v32 = vmul.f32 0.5, %v3573_v26  ;;  %2186 = vst [vmem:[%s3498_s17 + $0x60] sm:$0xff] %v3573_v26  ;;  %v3586_v34 = vadd.f32 %v3489_v33, %v1196_v30  ;;  %2850 = vpow2.f32 %v1246_v25 }
 0x31d   : > { %v1252_v36 = vmul.f32 1.442695, %v1222_v28  ;;  %v1223_v10 = vmul.f32 0.5, %v3579_v29  ;;  %2189 = vst [vmem:[%s3498_s17 + $0x78] sm:$0xff] %v3579_v29  ;;  %1298 = vrot.lane.b32.xlu1 %v2839_v31, %s3121_s26  ;;  %v2841_v38 = vpop.eup %2840  ;;  %v1264_v31 = vld [vmem:[%s3618_s25 + $0x40] sm:$0xff] }
 0x31e   : > { %v1248_v41 = vmul.f32 1.442695, %v1220_v32  ;;  %v1221_v42 = vmul.f32 0.5, %v3586_v34  ;;  %2187 = vst [vmem:[%s3498_s17 + $0x68] sm:$0xff] %v3586_v34  ;;  %v2843_v44 = vpop.eup %2842 }
 0x31f   : > { %1300 = vrot.lane.b32.xlu0 %v2841_v38, %s3121_s26  ;;  %v1254_v33 = vmul.f32 1.442695, %v1223_v10  ;;  %v1265_v38 = vld [vmem:[%s3618_s25 + $0x48] sm:$0xff] }
 0x320   : > { %2852 = vpow2.f32 %v1248_v41  ;;  %v1250_v40 = vmul.f32 1.442695, %v1221_v42 }
 0x321   : > { %2854 = vpow2.f32 %v1252_v36  ;;  %1302 = vrot.lane.b32.xlu1 %v2843_v44, %s3121_s26 }
 0x322   : > { %v2845_v45 = vpop.eup %2844  ;;  %2856 = vpow2.f32 %v1250_v40 }
 0x323   : > { %1304 = vrot.lane.b32.xlu0 %v2845_v45, %s3121_s26  ;;  %2858 = vpow2.f32 %v1254_v33  ;;  %v1266_v33 = vld [vmem:[%s3618_s25 + $0x50] sm:$0xff] }
 0x324   : > { %v2847_v46 = vpop.eup %2846 }
 0x325   : > { %1306 = vrot.lane.b32.xlu1 %v2847_v46, %s3121_s26  ;;  %v2849_v47 = vpop.eup %2848  ;;  %v1267_v46 = vld [vmem:[%s3618_s25 + $0x58] sm:$0xff] }
 0x326   : > { %v2851_v48 = vpop.eup %2850 }
 0x327   : > { %1308 = vrot.lane.b32.xlu0 %v2849_v47, %s3121_s26 }
 0x329   : > { %1310 = vrot.lane.b32.xlu1 %v2851_v48, %s3121_s26 }
 0x32a   : > { %v2853_v49 = vpop.eup %2852 }
 0x32b   : > { %v2855_v53 = vpop.eup %2854  ;;  %1312 = vrot.lane.b32.xlu0 %v2853_v49, %s3121_s26 }
 0x32c   : > { %v2857_v55 = vpop.eup %2856 }
 0x32d   : > { %1314 = vrot.lane.b32.xlu1 %v2857_v55, %s3121_s26  ;;  %v2859_v57 = vpop.eup %2858  ;;  %v1269_v55 = vld [vmem:[%s3618_s25 + $0x68] sm:$0xff] }
 0x32f   : > { %1316 = vrot.lane.b32.xlu0 %v2855_v53, %s3121_s26 }
 0x331   : > { %1318 = vrot.lane.b32.xlu1 %v2859_v57, %s3121_s26 }
 0x37c   : > { %v1293_v59 = vpop.permute.xlu1 %1292 }
 0x37d   : > { %v1289_v62 = vpop.permute.xlu0 %1288  ;;  %v1338_v4 = vmul.f32 %v1293_v59, %v1258_v63 }
 0x37e   : > { %v1336_v2 = vmul.f32 %v1289_v62, %v1256_v61  ;;  %v1270_v61 = vld [vmem:[%s3618_s25 + $0x70] sm:$0xff] }
 0x37f   : > { %v1354_v17 = vadd.f32 %v1338_v4, %v3492_v35 }
 0x380   : > { %v1295_v3 = vpop.permute.xlu1 %1294  ;;  %v1352_v14 = vadd.f32 %v1336_v2, %v3495_v37  ;;  %v1262_v37 = vld [vmem:[%s3618_s25 + $0x30] sm:$0xff] }
 0x381   : > { %v1339_v6 = vmul.f32 %v1295_v3, %v1259_v0  ;;  %v1291_v7 = vpop.permute.xlu0 %1290  ;;  %v1271_v0 = vld [vmem:[%s3618_s25 + $0x78] sm:$0xff] }
 0x382   : > { %v1337_v11 = vmul.f32 %v1291_v7, %v1257_v1 }
 0x383   : > { %v1355_v13 = vadd.f32 %v1339_v6, %v3503_v39 }
 0x384   : > { %v1353_v15 = vadd.f32 %v1337_v11, %v3509_v43  ;;  %v1263_v43 = vld [vmem:[%s3618_s25 + $0x38] sm:$0xff] }
 0x385   : > { %v1369_v8 = vpack.c.bf16 %v1355_v13, %v1354_v17  ;;  %v2807_v13 = vld [vmem:[%s3903_s12 + $0x10] ss:$8 sps:$4 sm:$0xff]   ;;  %v2815_v17 = vld [vmem:[%s3903_s12 + $0x34] ss:$8 sps:$4 sm:$0xff]  }
 0x386   : > { %v1368_v18 = vpack.c.bf16 %v1353_v15, %v1352_v14  ;;  %v2812_v14 = vld [vmem:[%s3903_s12 + $0x24] ss:$8 sps:$4 sm:$0xff]   ;;  %v2810_v15 = vld [vmem:[%s3903_s12 + $0x20] ss:$8 sps:$4 sm:$0xff]  }
 0x388   : > { %2655 = vmatprep.mubr.msk.bf16.mxu0 %vm1399_vm1, %v1368_v18  ;;  %v2813_v18 = vld [vmem:[%s3903_s12 + $0x30] ss:$8 sps:$4 sm:$0xff]  }
 0x389   : > { %2656 = vmatmul.mubr.msk.bf16.vlgmr.msra.gmra.mrb[16].mxu0 %vm1399_vm1, %v1369_v8  ;;  %v2818_v8 = vld [vmem:[%s3903_s12 + $0x44] ss:$8 sps:$4 sm:$0xff]  }
 0x38d   : > { %v1297_v20 = vpop.permute.xlu0 %1296 }
 0x38e   : > { %v1340_v39 = vmul.f32 %v1297_v20, %v1260_v19  ;;  %v2816_v19 = vld [vmem:[%s3903_s12 + $0x40] ss:$8 sps:$4 sm:$0xff]   ;;  %v2821_v20 = vld [vmem:[%s3903_s12 + $0x54] ss:$8 sps:$4 sm:$0xff]  }
 0x38f   : > { %v1299_v23 = vpop.permute.xlu1 %1298 }
 0x390   : > { %v1341_v24 = vmul.f32 %v1299_v23, %v1261_v21  ;;  %v1356_v35 = vadd.f32 %v1340_v39, %v3521_v54  ;;  %v2819_v21 = vld [vmem:[%s3903_s12 + $0x50] ss:$8 sps:$4 sm:$0xff]   ;;  %v2395_v39 = vld [vmem:[%s3900_s9] ss:$0 sm:$0xff] }
 0x391   : > { %v1301_v25 = vpop.permute.xlu0 %1300 }
 0x392   : > { %v1357_v27 = vadd.f32 %v1341_v24, %v3535_v60  ;;  %v1342_v28 = vmul.f32 %v1301_v25, %v1262_v37 }
 0x393   : > { %v1303_v30 = vpop.permute.xlu1 %1302 }
 0x394   : > { %v1370_v32 = vpack.c.bf16 %v1357_v27, %v1356_v35  ;;  %v1343_v36 = vmul.f32 %v1303_v30, %v1263_v43  ;;  %v1358_v41 = vadd.f32 %v1342_v28, %v3518_v51 }
 0x395   : > { %v1305_v10 = vpop.permute.xlu0 %1304 }
 0x396   : > { %v1359_v42 = vadd.f32 %v1343_v36, %v3527_v56  ;;  %v1344_v44 = vmul.f32 %v1305_v10, %v1264_v31  ;;  %2659 = vmatprep.mubr.msk.bf16.mxu0 %vm1399_vm1, %v1370_v32  ;;  %v1268_v56 = vld [vmem:[%s3618_s25 + $0x60] sm:$0xff]  ;;  %s2226_s25 = sshll.u32 %s3498_s17, 4  ;;  %s3024_s17 = scalar_lea.vmem %s3023_s20, 4096  ;;  %s3740_s25 = int_to_ptr.vmem [resolvable:$true] %s2226_s25 }
 0x397   : > { %v1307_v54 = vpop.permute.xlu1 %1306  ;;  %s3018_s14 = scalar_lea.vmem %s3740_s25, 2048  ;;  %p3025_p9 = scmp.lt.s32.totalorder %s3740_s25, %s3023_s20 }
 0x398   : > { %v1371_v60 = vpack.c.bf16 %v1359_v42, %v1358_v41  ;;  %v1345_v40 = vmul.f32 %v1307_v54, %v1265_v38  ;;  %v1360_v47 = vadd.f32 %v1344_v44, %v3549_v9  ;;  %p3019_p10 = scmp.ne.s32.totalorder %s3740_s25, %s3018_s14  ;;  %p3026_p13 = scmp.lt.s32.totalorder %s3024_s17, %s3018_s14 }
 0x399   : > { %v1309_v45 = vpop.permute.xlu0 %1308 }
 0x39a   : > { %v1361_v48 = vadd.f32 %v1345_v40, %v3561_v16  ;;  %v1346_v49 = vmul.f32 %v1309_v45, %v1266_v33  ;;  %2660 = vmatmul.mubr.msk.bf16.gmra.mrb[20].mxu0 %vm1399_vm1, %v1371_v60  ;;  %p3020_p12 = pnand %p3019_p10, %p3925_p11  ;;  %p3027_p1 = por %p3026_p13, %p3025_p9 }
 0x39b   : > { %v1311_v51 = vpop.permute.xlu1 %1310 }
 0x39c   : > { %v1372_v50 = vpack.c.bf16 %v1361_v48, %v1360_v47  ;;  %v1347_v52 = vmul.f32 %v1311_v51, %v1267_v46  ;;  %v1362_v57 = vadd.f32 %v1346_v49, %v3546_v5  ;;  %p3021_p8 = pneg %p3020_p12 }
 0x39d   : > { %v1313_v53 = vpop.permute.xlu0 %1312 }
 0x39e   : > { %v1363_v58 = vadd.f32 %v1347_v52, %v3554_v12  ;;  %v1348_v59 = vmul.f32 %v1313_v53, %v1268_v56  ;;  %2663 = vmatprep.mubr.msk.bf16.mxu0 %vm1399_vm1, %v1372_v50  ;;  %p3028_p3 = pnand %p3027_p1, %p3021_p8 }
 0x39f   : > { %v1315_v9 = vpop.permute.xlu1 %1314 }
 0x3a0   : > { %v1373_v16 = vpack.c.bf16 %v1363_v58, %v1362_v57  ;;  %v1349_v62 = vmul.f32 %v1315_v9, %v1269_v55  ;;  %v1364_v1 = vadd.f32 %v1348_v59, %v3573_v26  ;;  %v2803_v26 = vld [vmem:[%s3901_s10 + $0x18] sm:$0xff]  }
 0x3a1   : > { %v1317_v63 = vpop.permute.xlu0 %1316  ;;  %2677 = vmatprep.subr.bf16.mxu1 %v2803_v26 }
 0x3a2   : > { %v1365_v2 = vadd.f32 %v1349_v62, %v3586_v34  ;;  %v1350_v3 = vmul.f32 %v1317_v63, %v1270_v61  ;;  %2664 = vmatmul.mubr.msk.bf16.gmra.mrb[24].mxu0 %vm1399_vm1, %v1373_v16  ;;  %2678 = vmatpush3.bf16.msra.mxu1 %v2803_v26  ;;  %v2804_v34 = vld [vmem:[%s3903_s12] ss:$8 sps:$4 sm:$0xff]  }
 0x3a3   : > { %v1319_v4 = vpop.permute.xlu1 %1318 }
 0x3a4   : > { %v1374_v5 = vpack.c.bf16 %v1365_v2, %v1364_v1  ;;  %v1351_v6 = vmul.f32 %v1319_v4, %v1271_v0  ;;  %v1366_v12 = vadd.f32 %v1350_v3, %v3570_v22  ;;  %v2806_v22 = vld [vmem:[%s3903_s12 + $0x4] ss:$8 sps:$4 sm:$0xff]  }
 0x3a5   : > { %1837 = vmatprep.subr.bf16.mxu0 %v2806_v22 }
 0x3a6   : > { %v1367_v7 = vadd.f32 %v1351_v6, %v3579_v29  ;;  %2667 = vmatprep.mubr.msk.bf16.mxu0 %vm1399_vm1, %v1374_v5  ;;  %v2809_v29 = vld [vmem:[%s3903_s12 + $0x14] ss:$8 sps:$4 sm:$0xff]   ;;  %1838 = vmatpush1.bf16.msra.mxu0 %v2804_v34 }
 0x3a7   : > { %1839 = vmatprep.subr.bf16.mxu0 %v2809_v29 }
 0x3a8   : > { %v1375_v11 = vpack.c.bf16 %v1367_v7, %v1366_v12 }
 0x3aa   : > { %2668 = vmatmul.mubr.msk.bf16.gmra.mrb[28].mxu0 %vm1399_vm1, %v1375_v11 }
 0x3ab   : > { %1840 = vmatpush1.bf16.msra.mxu0 %v2807_v13 }
 0x3ac   : > { %1841 = vmatprep.subr.bf16.mxu0 %v2812_v14 }
 0x3af   : > { %1842 = vmatpush1.bf16.msra.mxu0 %v2810_v15  ;;  %v2824_v15 = vld [vmem:[%s3903_s12 + $0x64] ss:$8 sps:$4 sm:$0xff]  }
 0x3b0   : > { %1843 = vmatprep.subr.bf16.mxu0 %v2815_v17  ;;  %v2822_v17 = vld [vmem:[%s3903_s12 + $0x60] ss:$8 sps:$4 sm:$0xff]  }
 0x3b3   : > { %1844 = vmatpush1.bf16.msra.mxu0 %v2813_v18  ;;  %v2827_v18 = vld [vmem:[%s3903_s12 + $0x74] ss:$8 sps:$4 sm:$0xff]  }
 0x3b4   : > { %1845 = vmatprep.subr.bf16.mxu0 %v2818_v8  ;;  %v2825_v8 = vld [vmem:[%s3903_s12 + $0x70] ss:$8 sps:$4 sm:$0xff]  }
 0x3b7   : > { %1846 = vmatpush1.bf16.msra.mxu0 %v2816_v19  ;;  %v3122_v19 = vmov 0  }
 0x3b8   : > { %1847 = vmatprep.subr.bf16.mxu0 %v2821_v20  ;;  %1869 = vmatprep.mubr.bf16.mxu0 %v3122_v19  ;;  %v2406_v20 = vld [vmem:[%s3902_s11] ss:$0 sm:$0xff] }
 0x3bb   : > { %1848 = vmatpush1.bf16.msra.mxu0 %v2819_v21 }
 0x3bc   : > { %1849 = vmatprep.subr.bf16.mxu0 %v2824_v15 }
 0x3bf   : > { %1850 = vmatpush1.bf16.msra.mxu0 %v2822_v17 }
 0x3c0   : > { %1851 = vmatprep.subr.bf16.mxu0 %v2827_v18 }
 0x3c3   : > { %1852 = vmatpush1.bf16.msra.mxu0 %v2825_v8 }
 0x45c   : > { %v2657_v23 = vpop.f32.mrb[16].mxu0 }
 0x45d   : > { %v1467_v37 = vadd.f32 %v2657_v23, %v2395_v39  ;;  %v1458_v24 = vpop.f32.mrb[17].mxu0 }
 0x45e   : > { %v1459_v25 = vadd.f32 %v2395_v39, %v1458_v24  ;;  %v2658_v43 = vpop.f32.mrb[18].mxu0 }
 0x45f   : > { %v1470_v35 = vadd.f32 %v2658_v43, %v2395_v39  ;;  %v1461_v27 = vpop.f32.mrb[19].mxu0  ;;  %v1523_v30 = vmax.f32 %v1467_v37, 0.0 }
 0x460   : > { %v1462_v28 = vadd.f32 %v2395_v39, %v1461_v27  ;;  %v1521_v32 = vmax.f32 %v1459_v25, 0.0 }
 0x461   : > { %v1524_v31 = vmax.f32 %v1470_v35, 0.0 }
 0x462   : > { %v1522_v36 = vmax.f32 %v1462_v28, 0.0 }
 0x463   : > { %v1538_v10 = vpack.c.bf16 %v1524_v31, %v1523_v30 }
 0x464   : > { %v1537_v38 = vpack.c.bf16 %v1522_v36, %v1521_v32 }
 0x466   : > { %2679 = vmatprep.mubr.msk.bf16.mxu1 %vm1086_vm0, %v1537_v38 }
 0x467   : > { %2680 = vmatmul.mubr.msk.bf16.vlgmr.msra.gmra.mrb[48].mxu1 %vm1086_vm0, %v1538_v10 }
 0x46d   : > { %v2661_v41 = vpop.f32.mrb[20].mxu0 }
 0x46e   : > { %v1483_v42 = vadd.f32 %v2661_v41, %v2395_v39  ;;  %v1474_v44 = vpop.f32.mrb[21].mxu0 }
 0x46f   : > { %v1475_v54 = vadd.f32 %v2395_v39, %v1474_v44  ;;  %v2662_v33 = vpop.f32.mrb[22].mxu0 }
 0x470   : > { %v1486_v60 = vadd.f32 %v2662_v33, %v2395_v39  ;;  %v1477_v40 = vpop.f32.mrb[23].mxu0  ;;  %v1527_v46 = vmax.f32 %v1483_v42, 0.0 }
 0x471   : > { %v1478_v45 = vadd.f32 %v2395_v39, %v1477_v40  ;;  %v1525_v48 = vmax.f32 %v1475_v54, 0.0 }
 0x472   : > { %v1528_v47 = vmax.f32 %v1486_v60, 0.0 }
 0x473   : > { %v1526_v49 = vmax.f32 %v1478_v45, 0.0 }
 0x474   : > { %v1540_v51 = vpack.c.bf16 %v1528_v47, %v1527_v46 }
 0x475   : > { %v1539_v56 = vpack.c.bf16 %v1526_v49, %v1525_v48  ;;  %v2665_v50 = vpop.f32.mrb[24].mxu0 }
 0x476   : > { %v1499_v52 = vadd.f32 %v2665_v50, %v2395_v39  ;;  %v1490_v53 = vpop.f32.mrb[25].mxu0 }
 0x477   : > { %v1491_v55 = vadd.f32 %v2395_v39, %v1490_v53  ;;  %v2666_v57 = vpop.f32.mrb[26].mxu0  ;;  %2683 = vmatprep.mubr.msk.bf16.mxu1 %vm1086_vm0, %v1539_v56 }
 0x478   : > { %v1502_v58 = vadd.f32 %v2666_v57, %v2395_v39  ;;  %v1493_v59 = vpop.f32.mrb[27].mxu0  ;;  %2684 = vmatmul.mubr.msk.bf16.gmra.mrb[52].mxu1 %vm1086_vm0, %v1540_v51  ;;  %v1531_v61 = vmax.f32 %v1499_v52, 0.0 }
 0x479   : > { %v1494_v9 = vadd.f32 %v2395_v39, %v1493_v59  ;;  %v1529_v62 = vmax.f32 %v1491_v55, 0.0 }
 0x47a   : > { %v1532_v16 = vmax.f32 %v1502_v58, 0.0 }
 0x47b   : > { %v1530_v63 = vmax.f32 %v1494_v9, 0.0 }
 0x47c   : > { %v1542_v0 = vpack.c.bf16 %v1532_v16, %v1531_v61 }
 0x47d   : > { %v1541_v1 = vpack.c.bf16 %v1530_v63, %v1529_v62  ;;  %v2669_v2 = vpop.f32.mrb[28].mxu0 }
 0x47e   : > { %v1515_v3 = vadd.f32 %v2669_v2, %v2395_v39  ;;  %v1506_v4 = vpop.f32.mrb[29].mxu0 }
 0x47f   : > { %v1507_v5 = vadd.f32 %v2395_v39, %v1506_v4  ;;  %v2670_v6 = vpop.f32.mrb[30].mxu0  ;;  %2687 = vmatprep.mubr.msk.bf16.mxu1 %vm1086_vm0, %v1541_v1 }
 0x480   : > { %v1518_v12 = vadd.f32 %v2670_v6, %v2395_v39  ;;  %v1509_v7 = vpop.f32.mrb[31].mxu0  ;;  %2688 = vmatmul.mubr.msk.bf16.gmra.mrb[56].mxu1 %vm1086_vm0, %v1542_v0  ;;  %v1535_v26 = vmax.f32 %v1515_v3, 0.0 }
 0x481   : > { %v1510_v11 = vadd.f32 %v2395_v39, %v1509_v7  ;;  %v1533_v22 = vmax.f32 %v1507_v5, 0.0 }
 0x482   : > { %v1536_v34 = vmax.f32 %v1518_v12, 0.0 }
 0x483   : > { %v1534_v29 = vmax.f32 %v1510_v11, 0.0 }
 0x484   : > { %v1544_v13 = vpack.c.bf16 %v1536_v34, %v1535_v26 }
 0x485   : > { %v1543_v14 = vpack.c.bf16 %v1534_v29, %v1533_v22 }
 0x487   : > { %2691 = vmatprep.mubr.msk.bf16.mxu1 %vm1086_vm0, %v1543_v14 }
 0x488   : > { %2692 = vmatmul.mubr.msk.bf16.gmra.mrb[60].mxu1 %vm1086_vm0, %v1544_v13 }
 0x53a   : > { %v2681_v21 = vpop.f32.mrb[48].mxu1 }
 0x53b   : > { %v1651_v39 = vadd.f32 %v2681_v21, %v2406_v20  ;;  %v1642_v23 = vpop.f32.mrb[49].mxu1 }
 0x53c   : > { %v1643_v37 = vadd.f32 %v2406_v20, %v1642_v23  ;;  %v2682_v24 = vpop.f32.mrb[50].mxu1 }
 0x53d   : > { %v1654_v25 = vadd.f32 %v2682_v24, %v2406_v20  ;;  %v1645_v43 = vpop.f32.mrb[51].mxu1  ;;  %v1707_v27 = vmax.f32 %v1651_v39, 0.0 }
 0x53e   : > { %v1646_v35 = vadd.f32 %v2406_v20, %v1645_v43  ;;  %v1705_v30 = vmax.f32 %v1643_v37, 0.0 }
 0x53f   : > { %v1708_v28 = vmax.f32 %v1654_v25, 0.0 }
 0x540   : > { %v1706_v31 = vmax.f32 %v1646_v35, 0.0 }
 0x541   : > { %v1722_v32 = vpack.c.bf16 %v1708_v28, %v1707_v27 }
 0x542   : > { %v1721_v36 = vpack.c.bf16 %v1706_v31, %v1705_v30 }
 0x544   : > { %1870 = vmatmul.mubr.bf16.vlgmr.msra.gmra.mrb[32].mxu0 %v1721_v36 }
 0x545   : > { %1879 = vmatprep.mubr.bf16.mxu0 %v3122_v19 }
 0x54b   : > { %v2685_v10 = vpop.f32.mrb[52].mxu1 }
 0x54c   : > { %v1667_v38 = vadd.f32 %v2685_v10, %v2406_v20  ;;  %v1658_v41 = vpop.f32.mrb[53].mxu1  ;;  %1880 = vmatmul.mubr.bf16.gmra.mrb[36].mxu0 %v1722_v32 }
 0x54d   : > { %v1659_v42 = vadd.f32 %v2406_v20, %v1658_v41  ;;  %v2686_v44 = vpop.f32.mrb[54].mxu1  ;;  %1889 = vmatprep.mubr.bf16.mxu0 %v3122_v19 }
 0x54e   : > { %v1670_v54 = vadd.f32 %v2686_v44, %v2406_v20  ;;  %v1661_v33 = vpop.f32.mrb[55].mxu1  ;;  %v1711_v40 = vmax.f32 %v1667_v38, 0.0 }
 0x54f   : > { %v1662_v60 = vadd.f32 %v2406_v20, %v1661_v33  ;;  %v1709_v46 = vmax.f32 %v1659_v42, 0.0 }
 0x550   : > { %v1712_v45 = vmax.f32 %v1670_v54, 0.0 }
 0x551   : > { %v1710_v47 = vmax.f32 %v1662_v60, 0.0 }
 0x552   : > { %v1724_v48 = vpack.c.bf16 %v1712_v45, %v1711_v40 }
 0x553   : > { %v1723_v49 = vpack.c.bf16 %v1710_v47, %v1709_v46  ;;  %v2689_v51 = vpop.f32.mrb[56].mxu1 }
 0x554   : > { %v1683_v56 = vadd.f32 %v2689_v51, %v2406_v20  ;;  %v1674_v50 = vpop.f32.mrb[57].mxu1 }
 0x555   : > { %v1675_v52 = vadd.f32 %v2406_v20, %v1674_v50  ;;  %v2690_v53 = vpop.f32.mrb[58].mxu1  ;;  %1890 = vmatmul.mubr.bf16.gmra.mrb[40].mxu0 %v1723_v49 }
 0x556   : > { %v1686_v55 = vadd.f32 %v2690_v53, %v2406_v20  ;;  %v1677_v57 = vpop.f32.mrb[59].mxu1  ;;  %1899 = vmatprep.mubr.bf16.mxu0 %v3122_v19  ;;  %v1715_v59 = vmax.f32 %v1683_v56, 0.0 }
 0x557   : > { %v1678_v58 = vadd.f32 %v2406_v20, %v1677_v57  ;;  %v1713_v61 = vmax.f32 %v1675_v52, 0.0 }
 0x558   : > { %v1716_v9 = vmax.f32 %v1686_v55, 0.0 }
 0x559   : > { %v1714_v16 = vmax.f32 %v1678_v58, 0.0 }
 0x55a   : > { %v1726_v62 = vpack.c.bf16 %v1716_v9, %v1715_v59 }
 0x55b   : > { %v1725_v63 = vpack.c.bf16 %v1714_v16, %v1713_v61  ;;  %v2693_v0 = vpop.f32.mrb[60].mxu1 }
 0x55c   : > { %v1699_v1 = vadd.f32 %v2693_v0, %v2406_v20  ;;  %v1690_v2 = vpop.f32.mrb[61].mxu1 }
 0x55d   : > { %v1691_v3 = vadd.f32 %v2406_v20, %v1690_v2  ;;  %v2694_v4 = vpop.f32.mrb[62].mxu1  ;;  %1900 = vmatmul.mubr.bf16.gmra.mrb[44].mxu0 %v1724_v48 }
 0x55e   : > { %v1702_v5 = vadd.f32 %v2694_v4, %v2406_v20  ;;  %v1693_v6 = vpop.f32.mrb[63].mxu1  ;;  %1909 = vmatprep.mubr.bf16.mxu0 %v3122_v19  ;;  %v1719_v7 = vmax.f32 %v1699_v1, 0.0 }
 0x55f   : > { %v1694_v12 = vadd.f32 %v2406_v20, %v1693_v6  ;;  %v1717_v26 = vmax.f32 %v1691_v3, 0.0 }
 0x560   : > { %v1720_v11 = vmax.f32 %v1702_v5, 0.0 }
 0x561   : > { %v1718_v34 = vmax.f32 %v1694_v12, 0.0 }
 0x562   : > { %v1728_v22 = vpack.c.bf16 %v1720_v11, %v1719_v7 }
 0x563   : > { %v1727_v29 = vpack.c.bf16 %v1718_v34, %v1717_v26 }
 0x565   : > { %1910 = vmatmul.mubr.bf16.gmra.mrb[48].mxu0 %v1725_v63 }
 0x566   : > { %1919 = vmatprep.mubr.bf16.mxu0 %v3122_v19 }
 0x56d   : > { %1920 = vmatmul.mubr.bf16.gmra.mrb[52].mxu0 %v1726_v62 }
 0x56e   : > { %1929 = vmatprep.mubr.bf16.mxu0 %v3122_v19 }
 0x575   : > { %1930 = vmatmul.mubr.bf16.gmra.mrb[56].mxu0 %v1727_v29 }
 0x576   : > { %1939 = vmatprep.mubr.bf16.mxu0 %v3122_v19 }
 0x57d   : > { %1940 = vmatmul.mubr.bf16.gmra.mrb[60].mxu0 %v1728_v22 }
 0x57e   : > { %3031 = shalt.err (!%p3028_p3)
}
 0x57f   : > { %s3032_s28 = scalar_lea.hbm %s3738_s27, 2048  ;;  %s3036_s29 = scalar_lea.hbm %s3906_s15, 8192 }
 0x580   : > { %p3033_p4 = scmp.ne.s32.totalorder %s3738_s27, %s3032_s28  ;;  %p3037_p2 = scmp.lt.u32.totalorder %s3738_s27, %s3906_s15 }
 0x581   : > { %p3038_p7 = scmp.lt.u32.totalorder %s3036_s29, %s3032_s28  ;;  %p3040_p10 = scmp.lt.u32.totalorder %s3032_s28, %s3738_s27 }
 0x582   : > { %p3034_p5 = pnand %p3033_p4, %p3925_p11 }
 0x583   : > { %p3039_p6 = por %p3038_p7, %p3037_p2 }
 0x584   : > { %p3035_p0 = pneg %p3034_p5 }
 0x585   : > { %p3041_p12 = por %p3040_p10, %p3039_p6 }
 0x587   : > { %p3042_p8 = pnand %p3041_p12, %p3035_p0 }
 0x589   : > { %3045 = shalt.err (!%p3042_p8)
}
 0x58a   : > { %s3124_s14 = smov 128   ;;  %s3125_s17 = smov 8   ;;  %v1747_v13 = vlaneseq }
 0x58b   : > { %2714 = dma.vmem_to_hbm [thread:$0]  (%p3925_p11), %s3740_s25, 2048, %s3738_s27, %s2196_s13, %s3124_s14, %s3124_s14, %s3125_s17  }
 0x58c   : > { %v1748_v14 = vshrl.u32 %v1747_v13, 7  ;;  %s3926_s29 = sld [smem:[#allocation15_spill]]  ;;  %s3927_s25 = sshll.u32 %s3312_s23, 8 }
 0x58d   : > { %s3790_s27 = scalar_lea.vmem [#allocation5], %s3927_s25  ;;  %s2479_s13 = sshll.u32 %s3230_s22, 12 }
 0x58e   : > { %v1749_v15 = vsub.s32 0, %v1748_v14  ;;  %v1753_v18 = vsub.s32 1, %v1748_v14  ;;  %s2210_s28 = sshll.u32 %s3790_s27, 4  ;;  %s3928_s14 = sld [smem:[#allocation16_spill]]  ;;  %s3845_s28 = int_to_ptr.vmem [resolvable:$true] %s2210_s28 }
 0x58f   : > { %s2191_s22 = scalar_lea.sflag [#allocation4], %s3312_s23  ;;  %s3046_s24 = scalar_lea.vmem %s3845_s28, 4096 }
 0x590   : > { %p3047_p9 = scmp.ne.s32.totalorder %s3845_s28, %s3046_s24  ;;  %s3126_s26 = smov [#allocation5]  }
 0x592   : > { %v1745_v17 = vld [vmem:[%s3926_s29] sm:$0x3]  ;;  %p3048_p13 = pnand %p3047_p9, %p3925_p11  ;;  %s3050_s29 = sshll.u32 %s3126_s26, 4  ;;  %s3051_s29 = int_to_ptr.vmem [resolvable:$false] %s3050_s29 }
 0x593   : > { %v3769_v8 = vrot.slane %v1745_v17, %v1749_v15  ;;  %v3771_v19 = vrot.slane %v1745_v17, %v1753_v18  ;;  %s3052_s25 = scalar_lea.vmem %s3051_s29, 8192  ;;  %p3053_p3 = scmp.lt.s32.totalorder %s3845_s28, %s3051_s29 }
 0x594   : > { %s3843_s17 = scalar_lea.hbm %s3928_s14, %s2479_s13  ;;  %p3049_p1 = pneg %p3048_p13 }
 0x595   : > { %p3054_p4 = scmp.lt.s32.totalorder %s3052_s25, %s3046_s24 }
 0x597   : > { %p3055_p5 = por %p3054_p4, %p3053_p3 }
 0x599   : > { %p3056_p0 = pnand %p3055_p5, %p3049_p1 }
 0x617   : > { %v1871_v20 = vpop.f32.mrb[32].mxu0 }
 0x618   : > { %v1872_v21 = vadd.f32 %v1871_v20, %v3769_v8  ;;  %v1873_v39 = vpop.f32.mrb[33].mxu0 }
 0x619   : > { %v1874_v23 = vadd.f32 %v1873_v39, %v3771_v19  ;;  %v1875_v37 = vpop.f32.mrb[34].mxu0 }
 0x61a   : > { %v2435_v24 = vmul.f32 -1.442695, %v1872_v21  ;;  %v1876_v25 = vadd.f32 %v1875_v37, %v3769_v8  ;;  %v1877_v43 = vpop.f32.mrb[35].mxu0 }
 0x61b   : > { %v2436_v35 = vmul.f32 -1.442695, %v1874_v23  ;;  %v1878_v27 = vadd.f32 %v1877_v43, %v3771_v19 }
 0x61c   : > { %2860 = vpow2.f32 %v2435_v24  ;;  %v2437_v28 = vmul.f32 -1.442695, %v1876_v25 }
 0x61d   : > { %2862 = vpow2.f32 %v2436_v35  ;;  %v2438_v30 = vmul.f32 -1.442695, %v1878_v27 }
 0x61e   : > { %2864 = vpow2.f32 %v2437_v28 }
 0x61f   : > { %2866 = vpow2.f32 %v2438_v30  ;;  %v1881_v31 = vpop.f32.mrb[36].mxu0 }
 0x620   : > { %v1882_v32 = vadd.f32 %v1881_v31, %v3769_v8  ;;  %v1883_v36 = vpop.f32.mrb[37].mxu0 }
 0x621   : > { %v1884_v10 = vadd.f32 %v1883_v36, %v3771_v19  ;;  %v1885_v38 = vpop.f32.mrb[38].mxu0 }
 0x622   : > { %v2439_v41 = vmul.f32 -1.442695, %v1882_v32  ;;  %v1886_v42 = vadd.f32 %v1885_v38, %v3769_v8  ;;  %v1887_v44 = vpop.f32.mrb[39].mxu0 }
 0x623   : > { %v2440_v54 = vmul.f32 -1.442695, %v1884_v10  ;;  %v1888_v33 = vadd.f32 %v1887_v44, %v3771_v19 }
 0x624   : > { %2868 = vpow2.f32 %v2439_v41  ;;  %v2441_v60 = vmul.f32 -1.442695, %v1886_v42 }
 0x625   : > { %2870 = vpow2.f32 %v2440_v54  ;;  %v2442_v40 = vmul.f32 -1.442695, %v1888_v33 }
 0x626   : > { %v2861_v45 = vpop.eup %2860  ;;  %2872 = vpow2.f32 %v2441_v60 }
 0x627   : > { %v2863_v46 = vpop.eup %2862  ;;  %v2046_v47 = vadd.f32 1.0, %v2861_v45  ;;  %2874 = vpow2.f32 %v2442_v40 }
 0x628   : > { %v2865_v48 = vpop.eup %2864  ;;  %v2047_v49 = vadd.f32 1.0, %v2863_v46  ;;  %v1891_v51 = vpop.f32.mrb[40].mxu0 }
 0x629   : > { %v2867_v56 = vpop.eup %2866  ;;  %2876 = vrcp.f32 %v2046_v47  ;;  %v2048_v50 = vadd.f32 1.0, %v2865_v48  ;;  %v1892_v52 = vadd.f32 %v1891_v51, %v3769_v8  ;;  %v1893_v53 = vpop.f32.mrb[41].mxu0 }
 0x62a   : > { %2878 = vrcp.f32 %v2047_v49  ;;  %v2049_v55 = vadd.f32 1.0, %v2867_v56  ;;  %v1894_v57 = vadd.f32 %v1893_v53, %v3771_v19  ;;  %v1895_v58 = vpop.f32.mrb[42].mxu0 }
 0x62b   : > { %2880 = vrcp.f32 %v2048_v50  ;;  %v2443_v59 = vmul.f32 -1.442695, %v1892_v52  ;;  %v1896_v9 = vadd.f32 %v1895_v58, %v3769_v8  ;;  %v1897_v61 = vpop.f32.mrb[43].mxu0 }
 0x62c   : > { %2882 = vrcp.f32 %v2049_v55  ;;  %v2444_v16 = vmul.f32 -1.442695, %v1894_v57  ;;  %v1898_v62 = vadd.f32 %v1897_v61, %v3771_v19 }
 0x62d   : > { %2884 = vpow2.f32 %v2443_v59  ;;  %v2445_v63 = vmul.f32 -1.442695, %v1896_v9 }
 0x62e   : > { %v2869_v0 = vpop.eup %2868  ;;  %2886 = vpow2.f32 %v2444_v16  ;;  %v2446_v1 = vmul.f32 -1.442695, %v1898_v62 }
 0x62f   : > { %v2871_v2 = vpop.eup %2870  ;;  %v2050_v3 = vadd.f32 1.0, %v2869_v0  ;;  %2888 = vpow2.f32 %v2445_v63 }
 0x630   : > { %v2873_v4 = vpop.eup %2872  ;;  %v2051_v5 = vadd.f32 1.0, %v2871_v2  ;;  %2890 = vpow2.f32 %v2446_v1  ;;  %v1901_v6 = vpop.f32.mrb[44].mxu0 }
 0x631   : > { %v2875_v12 = vpop.eup %2874  ;;  %2892 = vrcp.f32 %v2050_v3  ;;  %v2052_v7 = vadd.f32 1.0, %v2873_v4  ;;  %v1902_v11 = vadd.f32 %v1901_v6, %v3769_v8  ;;  %v1903_v26 = vpop.f32.mrb[45].mxu0 }
 0x632   : > { %2894 = vrcp.f32 %v2051_v5  ;;  %v2053_v34 = vadd.f32 1.0, %v2875_v12  ;;  %v1904_v22 = vadd.f32 %v1903_v26, %v3771_v19  ;;  %v1905_v29 = vpop.f32.mrb[46].mxu0 }
 0x633   : > { %v2877_v13 = vpop.eup %2876  ;;  %2896 = vrcp.f32 %v2052_v7  ;;  %v2447_v14 = vmul.f32 -1.442695, %v1902_v11  ;;  %v1906_v15 = vadd.f32 %v1905_v29, %v3769_v8  ;;  %v1907_v17 = vpop.f32.mrb[47].mxu0 }
 0x634   : > { %v2879_v18 = vpop.eup %2878  ;;  %2142 = vst [vmem:[%s3790_s27] sm:$0xff] %v2877_v13  ;;  %2898 = vrcp.f32 %v2053_v34  ;;  %v2448_v20 = vmul.f32 -1.442695, %v1904_v22  ;;  %v1908_v21 = vadd.f32 %v1907_v17, %v3771_v19 }
 0x635   : > { %v2881_v39 = vpop.eup %2880  ;;  %2143 = vst [vmem:[%s3790_s27 + $0x8] sm:$0xff] %v2879_v18  ;;  %2900 = vpow2.f32 %v2447_v14  ;;  %v2449_v23 = vmul.f32 -1.442695, %v1906_v15 }
 0x636   : > { %v2883_v37 = vpop.eup %2882  ;;  %2144 = vst [vmem:[%s3790_s27 + $0x10] sm:$0xff] %v2881_v39  ;;  %2902 = vpow2.f32 %v2448_v20  ;;  %v2450_v24 = vmul.f32 -1.442695, %v1908_v21 }
 0x637   : > { %v2885_v25 = vpop.eup %2884  ;;  %2145 = vst [vmem:[%s3790_s27 + $0x18] sm:$0xff] %v2883_v37  ;;  %2904 = vpow2.f32 %v2449_v23 }
 0x638   : > { %v2887_v43 = vpop.eup %2886  ;;  %v2054_v35 = vadd.f32 1.0, %v2885_v25  ;;  %2906 = vpow2.f32 %v2450_v24  ;;  %v1911_v27 = vpop.f32.mrb[48].mxu0 }
 0x639   : > { %v2889_v28 = vpop.eup %2888  ;;  %v2055_v30 = vadd.f32 1.0, %v2887_v43  ;;  %v1912_v31 = vadd.f32 %v1911_v27, %v3769_v8  ;;  %v1913_v32 = vpop.f32.mrb[49].mxu0 }
 0x63a   : > { %v2891_v36 = vpop.eup %2890  ;;  %2908 = vrcp.f32 %v2054_v35  ;;  %v2056_v10 = vadd.f32 1.0, %v2889_v28  ;;  %v1914_v38 = vadd.f32 %v1913_v32, %v3771_v19  ;;  %v1915_v41 = vpop.f32.mrb[50].mxu0 }
 0x63b   : > { %v2893_v42 = vpop.eup %2892  ;;  %2910 = vrcp.f32 %v2055_v30  ;;  %v2057_v44 = vadd.f32 1.0, %v2891_v36  ;;  %v2451_v54 = vmul.f32 -1.442695, %v1912_v31  ;;  %v1916_v33 = vadd.f32 %v1915_v41, %v3769_v8  ;;  %v1917_v60 = vpop.f32.mrb[51].mxu0 }
 0x63c   : > { %v2895_v40 = vpop.eup %2894  ;;  %2146 = vst [vmem:[%s3790_s27 + $0x20] sm:$0xff] %v2893_v42  ;;  %2912 = vrcp.f32 %v2056_v10  ;;  %v2452_v45 = vmul.f32 -1.442695, %v1914_v38  ;;  %v1918_v46 = vadd.f32 %v1917_v60, %v3771_v19 }
 0x63d   : > { %v2897_v47 = vpop.eup %2896  ;;  %2147 = vst [vmem:[%s3790_s27 + $0x28] sm:$0xff] %v2895_v40  ;;  %2914 = vrcp.f32 %v2057_v44  ;;  %v2453_v48 = vmul.f32 -1.442695, %v1916_v33 }
 0x63e   : > { %v2899_v49 = vpop.eup %2898  ;;  %2148 = vst [vmem:[%s3790_s27 + $0x30] sm:$0xff] %v2897_v47  ;;  %2916 = vpow2.f32 %v2451_v54  ;;  %v2454_v51 = vmul.f32 -1.442695, %v1918_v46 }
 0x63f   : > { %v2901_v56 = vpop.eup %2900  ;;  %2149 = vst [vmem:[%s3790_s27 + $0x38] sm:$0xff] %v2899_v49  ;;  %2918 = vpow2.f32 %v2452_v45 }
 0x640   : > { %v2903_v50 = vpop.eup %2902  ;;  %v2058_v52 = vadd.f32 1.0, %v2901_v56  ;;  %2920 = vpow2.f32 %v2453_v48  ;;  %v1921_v53 = vpop.f32.mrb[52].mxu0 }
 0x641   : > { %v2905_v55 = vpop.eup %2904  ;;  %v2059_v57 = vadd.f32 1.0, %v2903_v50  ;;  %2922 = vpow2.f32 %v2454_v51  ;;  %v1922_v58 = vadd.f32 %v1921_v53, %v3769_v8  ;;  %v1923_v59 = vpop.f32.mrb[53].mxu0 }
 0x642   : > { %v2907_v9 = vpop.eup %2906  ;;  %2924 = vrcp.f32 %v2058_v52  ;;  %v2060_v61 = vadd.f32 1.0, %v2905_v55  ;;  %v1924_v16 = vadd.f32 %v1923_v59, %v3771_v19  ;;  %v1925_v62 = vpop.f32.mrb[54].mxu0 }
 0x643   : > { %2926 = vrcp.f32 %v2059_v57  ;;  %v2061_v63 = vadd.f32 1.0, %v2907_v9  ;;  %v2455_v0 = vmul.f32 -1.442695, %v1922_v58  ;;  %v1926_v1 = vadd.f32 %v1925_v62, %v3769_v8  ;;  %v1927_v2 = vpop.f32.mrb[55].mxu0 }
 0x644   : > { %v2909_v3 = vpop.eup %2908  ;;  %2928 = vrcp.f32 %v2060_v61  ;;  %v2456_v4 = vmul.f32 -1.442695, %v1924_v16  ;;  %v1928_v5 = vadd.f32 %v1927_v2, %v3771_v19 }
 0x645   : > { %v2911_v6 = vpop.eup %2910  ;;  %2150 = vst [vmem:[%s3790_s27 + $0x40] sm:$0xff] %v2909_v3  ;;  %2930 = vrcp.f32 %v2061_v63  ;;  %v2457_v12 = vmul.f32 -1.442695, %v1926_v1 }
 0x646   : > { %v2913_v7 = vpop.eup %2912  ;;  %2151 = vst [vmem:[%s3790_s27 + $0x48] sm:$0xff] %v2911_v6  ;;  %2932 = vpow2.f32 %v2455_v0  ;;  %v2458_v11 = vmul.f32 -1.442695, %v1928_v5 }
 0x647   : > { %v2915_v26 = vpop.eup %2914  ;;  %2152 = vst [vmem:[%s3790_s27 + $0x50] sm:$0xff] %v2913_v7  ;;  %2934 = vpow2.f32 %v2456_v4 }
 0x648   : > { %v2917_v34 = vpop.eup %2916  ;;  %2153 = vst [vmem:[%s3790_s27 + $0x58] sm:$0xff] %v2915_v26  ;;  %2936 = vpow2.f32 %v2457_v12  ;;  %v1931_v22 = vpop.f32.mrb[56].mxu0 }
 0x649   : > { %v2919_v29 = vpop.eup %2918  ;;  %v2062_v13 = vadd.f32 1.0, %v2917_v34  ;;  %2938 = vpow2.f32 %v2458_v11  ;;  %v1932_v14 = vadd.f32 %v1931_v22, %v3769_v8  ;;  %v1933_v15 = vpop.f32.mrb[57].mxu0 }
 0x64a   : > { %v2921_v17 = vpop.eup %2920  ;;  %v2063_v18 = vadd.f32 1.0, %v2919_v29  ;;  %v1934_v20 = vadd.f32 %v1933_v15, %v3771_v19  ;;  %v1935_v21 = vpop.f32.mrb[58].mxu0 }
 0x64b   : > { %v2923_v39 = vpop.eup %2922  ;;  %2940 = vrcp.f32 %v2062_v13  ;;  %v2064_v23 = vadd.f32 1.0, %v2921_v17  ;;  %v2459_v37 = vmul.f32 -1.442695, %v1932_v14  ;;  %v1936_v24 = vadd.f32 %v1935_v21, %v3769_v8  ;;  %v1937_v25 = vpop.f32.mrb[59].mxu0 }
 0x64c   : > { %v2925_v43 = vpop.eup %2924  ;;  %2942 = vrcp.f32 %v2063_v18  ;;  %v2065_v35 = vadd.f32 1.0, %v2923_v39  ;;  %v2460_v27 = vmul.f32 -1.442695, %v1934_v20  ;;  %v1938_v28 = vadd.f32 %v1937_v25, %v3771_v19 }
 0x64d   : > { %v2927_v30 = vpop.eup %2926  ;;  %2154 = vst [vmem:[%s3790_s27 + $0x60] sm:$0xff] %v2925_v43  ;;  %2944 = vrcp.f32 %v2064_v23  ;;  %v2461_v31 = vmul.f32 -1.442695, %v1936_v24 }
 0x64e   : > { %v2929_v32 = vpop.eup %2928  ;;  %2155 = vst [vmem:[%s3790_s27 + $0x68] sm:$0xff] %v2927_v30  ;;  %2946 = vrcp.f32 %v2065_v35  ;;  %v2462_v36 = vmul.f32 -1.442695, %v1938_v28 }
 0x64f   : > { %v2931_v10 = vpop.eup %2930  ;;  %2156 = vst [vmem:[%s3790_s27 + $0x70] sm:$0xff] %v2929_v32  ;;  %2948 = vpow2.f32 %v2459_v37 }
 0x650   : > { %v2933_v38 = vpop.eup %2932  ;;  %2157 = vst [vmem:[%s3790_s27 + $0x78] sm:$0xff] %v2931_v10  ;;  %2950 = vpow2.f32 %v2460_v27  ;;  %v1941_v41 = vpop.f32.mrb[60].mxu0 }
 0x651   : > { %v2935_v42 = vpop.eup %2934  ;;  %v2066_v44 = vadd.f32 1.0, %v2933_v38  ;;  %2952 = vpow2.f32 %v2461_v31  ;;  %v1942_v54 = vadd.f32 %v1941_v41, %v3769_v8  ;;  %v1943_v33 = vpop.f32.mrb[61].mxu0 }
 0x652   : > { %v2937_v60 = vpop.eup %2936  ;;  %v2067_v40 = vadd.f32 1.0, %v2935_v42  ;;  %2954 = vpow2.f32 %v2462_v36  ;;  %v1944_v45 = vadd.f32 %v1943_v33, %v3771_v19  ;;  %v1945_v46 = vpop.f32.mrb[62].mxu0 }
 0x653   : > { %v2939_v47 = vpop.eup %2938  ;;  %2956 = vrcp.f32 %v2066_v44  ;;  %v2068_v48 = vadd.f32 1.0, %v2937_v60  ;;  %v2463_v49 = vmul.f32 -1.442695, %v1942_v54  ;;  %v1946_v51 = vadd.f32 %v1945_v46, %v3769_v8  ;;  %v1947_v56 = vpop.f32.mrb[63].mxu0 }
 0x654   : > { %2958 = vrcp.f32 %v2067_v40  ;;  %v2069_v50 = vadd.f32 1.0, %v2939_v47  ;;  %v2464_v52 = vmul.f32 -1.442695, %v1944_v45  ;;  %v1948_v53 = vadd.f32 %v1947_v56, %v3771_v19 }
 0x655   : > { %v2941_v55 = vpop.eup %2940  ;;  %2960 = vrcp.f32 %v2068_v48  ;;  %v2465_v57 = vmul.f32 -1.442695, %v1946_v51 }
 0x656   : > { %v2943_v58 = vpop.eup %2942  ;;  %2158 = vst [vmem:[%s3790_s27 + $0x80] sm:$0xff] %v2941_v55  ;;  %2962 = vrcp.f32 %v2069_v50  ;;  %v2466_v59 = vmul.f32 -1.442695, %v1948_v53 }
 0x657   : > { %v2945_v9 = vpop.eup %2944  ;;  %2159 = vst [vmem:[%s3790_s27 + $0x88] sm:$0xff] %v2943_v58  ;;  %2964 = vpow2.f32 %v2463_v49 }
 0x658   : > { %v2947_v61 = vpop.eup %2946  ;;  %2160 = vst [vmem:[%s3790_s27 + $0x90] sm:$0xff] %v2945_v9  ;;  %2966 = vpow2.f32 %v2464_v52 }
 0x659   : > { %v2949_v8 = vpop.eup %2948  ;;  %2161 = vst [vmem:[%s3790_s27 + $0x98] sm:$0xff] %v2947_v61  ;;  %2968 = vpow2.f32 %v2465_v57 }
 0x65a   : > { %v2951_v16 = vpop.eup %2950  ;;  %v2070_v19 = vadd.f32 1.0, %v2949_v8  ;;  %2970 = vpow2.f32 %v2466_v59 }
 0x65b   : > { %v2953_v62 = vpop.eup %2952  ;;  %v2071_v63 = vadd.f32 1.0, %v2951_v16 }
 0x65c   : > { %v2955_v0 = vpop.eup %2954  ;;  %2972 = vrcp.f32 %v2070_v19  ;;  %v2072_v1 = vadd.f32 1.0, %v2953_v62 }
 0x65d   : > { %v2957_v2 = vpop.eup %2956  ;;  %2974 = vrcp.f32 %v2071_v63  ;;  %v2073_v3 = vadd.f32 1.0, %v2955_v0 }
 0x65e   : > { %v2959_v4 = vpop.eup %2958  ;;  %2162 = vst [vmem:[%s3790_s27 + $0xa0] sm:$0xff] %v2957_v2  ;;  %2976 = vrcp.f32 %v2072_v1 }
 0x65f   : > { %v2961_v5 = vpop.eup %2960  ;;  %2163 = vst [vmem:[%s3790_s27 + $0xa8] sm:$0xff] %v2959_v4  ;;  %2978 = vrcp.f32 %v2073_v3 }
 0x660   : > { %v2963_v6 = vpop.eup %2962  ;;  %2164 = vst [vmem:[%s3790_s27 + $0xb0] sm:$0xff] %v2961_v5 }
 0x661   : > { %v2965_v12 = vpop.eup %2964  ;;  %2165 = vst [vmem:[%s3790_s27 + $0xb8] sm:$0xff] %v2963_v6 }
 0x662   : > { %v2967_v7 = vpop.eup %2966  ;;  %v2074_v11 = vadd.f32 1.0, %v2965_v12 }
 0x663   : > { %v2969_v26 = vpop.eup %2968  ;;  %v2075_v34 = vadd.f32 1.0, %v2967_v7 }
 0x664   : > { %v2971_v22 = vpop.eup %2970  ;;  %2980 = vrcp.f32 %v2074_v11  ;;  %v2076_v29 = vadd.f32 1.0, %v2969_v26 }
 0x665   : > { %2982 = vrcp.f32 %v2075_v34  ;;  %v2077_v13 = vadd.f32 1.0, %v2971_v22 }
 0x666   : > { %v2973_v14 = vpop.eup %2972  ;;  %2984 = vrcp.f32 %v2076_v29 }
 0x667   : > { %v2975_v15 = vpop.eup %2974  ;;  %2166 = vst [vmem:[%s3790_s27 + $0xc0] sm:$0xff] %v2973_v14  ;;  %2986 = vrcp.f32 %v2077_v13 }
 0x668   : > { %v2977_v17 = vpop.eup %2976  ;;  %2167 = vst [vmem:[%s3790_s27 + $0xc8] sm:$0xff] %v2975_v15 }
 0x669   : > { %v2979_v18 = vpop.eup %2978  ;;  %2168 = vst [vmem:[%s3790_s27 + $0xd0] sm:$0xff] %v2977_v17 }
 0x66a   : > { %2169 = vst [vmem:[%s3790_s27 + $0xd8] sm:$0xff] %v2979_v18 }
 0x66e   : > { %v2981_v20 = vpop.eup %2980 }
 0x66f   : > { %v2983_v21 = vpop.eup %2982  ;;  %2170 = vst [vmem:[%s3790_s27 + $0xe0] sm:$0xff] %v2981_v20 }
 0x670   : > { %v2985_v39 = vpop.eup %2984  ;;  %2171 = vst [vmem:[%s3790_s27 + $0xe8] sm:$0xff] %v2983_v21 }
 0x671   : > { %v2987_v23 = vpop.eup %2986  ;;  %2172 = vst [vmem:[%s3790_s27 + $0xf0] sm:$0xff] %v2985_v39 }
 0x672   : > { %2173 = vst [vmem:[%s3790_s27 + $0xf8] sm:$0xff] %v2987_v23 }
 0x673   : > { %3059 = shalt.err (!%p3056_p0)
}
 0x674   : > { %s3060_s27 = scalar_lea.hbm %s3843_s17, 4096  ;;  %s3064_s20 = scalar_lea.hbm %s3928_s14, 16384 }
 0x675   : > { %p3061_p2 = scmp.ne.s32.totalorder %s3843_s17, %s3060_s27  ;;  %p3065_p10 = scmp.lt.u32.totalorder %s3843_s17, %s3928_s14 }
 0x676   : > { %p3066_p12 = scmp.lt.u32.totalorder %s3064_s20, %s3060_s27  ;;  %p3068_p9 = scmp.lt.u32.totalorder %s3060_s27, %s3843_s17 }
 0x677   : > { %p3062_p7 = pnand %p3061_p2, %p3925_p11 }
 0x678   : > { %p3067_p8 = por %p3066_p12, %p3065_p10 }
 0x679   : > { %p3063_p6 = pneg %p3062_p7 }
 0x67a   : > { %p3069_p13 = por %p3068_p9, %p3067_p8 }
 0x67c   : > { %p3070_p1 = pnand %p3069_p13, %p3063_p6 }
 0x67e   : > { %3073 = shalt.err (!%p3070_p1)
}
 0x67f   : > { %s3127_s24 = smov 256   ;;  %s3128_s25 = smov 16  }
 0x680   : > { %2713 = dma.vmem_to_hbm [thread:$0]  (%p3925_p11), %s3845_s28, 4096, %s3843_s17, %s2191_s22, %s3127_s24, %s3127_s24, %s3128_s25  }
 0x681 PF: > { %s3929_s13 = sld [smem:[#allocation11_spill]]  ;;  %p2729_p3 = scmp.ge.s32.totalorder %s3116_s21, 2 }
 0x682   : > { %p3930_p4 = scmp.ne.s32.totalorder %s3923_s16, 0 }
 0x684   : > { %p2722_p5 = pnand %p2729_p3, %p3930_p4 }
 0x687   : > { %s2241_s18 = sand.u32 1, %s3929_s13  }
 0x688   : > { %s2242_s27 = scalar_lea.sflag [#allocation4], %s2241_s18 }
 0x689   : > { %3095 = dma.done.wait (!%p2722_p5), %s2242_s27, 4096  }
 0x68a   : > { %3097 = vsyncadd (!%p2722_p5), %s2242_s27, 4294963200  ;;  %s2251_s20 = scalar_lea.sflag [#allocation7], %s2241_s18 }
 0x68b   : > { %3099 = dma.done.wait (!%p2722_p5), %s2251_s20, 2048  }
 0x68c   : > { %3101 = vsyncadd (!%p2722_p5), %s2251_s20, 4294965248  ;;  %s3931_s21 = sld [smem:[#allocation13_spill]]  ;;  %s3932_s26 = sld [smem:[#allocation12_spill]] }
 0x68d   : > { %s3933_s20 = sld [smem:[#allocation14_spill]]  ;;  %s3934_s18 = smov %s3108_s19 }
 0x692   : > { %p32_p11 = scmp.ge.s32.totalorder %s3931_s21, 6   ;;  %s3935_s19 = smov %s3932_s26 }
 0x694   :  { %34 = sbr.rel (!%p32_p11) target bundleno = 10 (0xa), region = 141 }
 0x69b   :  { %2256 = vsyncpa [#allocation3], 1 }
 0x69c   :  { %2258 = vsyncpa [#allocation3 + $0x1], 1 }
 0x69d   :  { %2259 = vsyncpa [#allocation4], 1 }
 0x69e   :  { %2261 = vsyncpa [#allocation4 + $0x1], 1 }
 0x69f   :  { %2262 = vsyncpa [#allocation7], 1 }
 0x6a0   :  { %2264 = vsyncpa [#allocation7 + $0x1], 1 }

</bundles_post_ra>
